<compile_context>
chip_gen: v7x
topology: tpu7x:2x2x1
jax: 0.10.0
libtpu: 0.0.40
codegen_flags: <defaults>
</compile_context>

<pallas_src>
import functools

import numpy as np
import jax
import jax.numpy as jnp
from jax import lax
from jax.experimental import pallas as pl
from jax.experimental.pallas import tpu as pltpu


_PAD_BHALF = 1e18   # 0.5*|b|^2 sentinel for padded desc2 columns (never wins)
_BIG = 1e30         # "infinity" for the running-min accumulators (sqrt stays finite)
_INT_BIG = 2 ** 30  # int sentinel for argmin masking


def _round_up(x, m):
    return ((x + m - 1) // m) * m


# ----------------------------------------------------------------------------
# Hardware-awareness helpers (all best-effort; safe fallbacks everywhere).
# ----------------------------------------------------------------------------
def _tpu_info():
    fn = getattr(pltpu, "get_tpu_info", None)
    if fn is None:
        return None
    try:
        return fn()
    except Exception:
        return None


def _num_tensorcores():
    info = _tpu_info()
    if info is not None:
        for name in ("num_cores", "num_tensorcores", "tensorcore_count",
                     "cores_per_chip"):
            v = getattr(info, name, None)
            if isinstance(v, int) and v > 0:
                return v
    return 1   # conservative: treat unknown chips as single-TC


def _vmem_capacity_bytes():
    info = _tpu_info()
    if info is not None:
        v = getattr(info, "vmem_capacity_bytes", None)
        if isinstance(v, int) and v > 0:
            return v
    return 64 << 20   # v7x-safe assumption when the query is unavailable


def _vmem_tile_budget_bytes():
    # Budget for (double-buffered DMA blocks + in-tile f32 intermediates):
    # ~40% of physical VMEM, capped so v5e/v6e (128 MiB) stay well clear of
    # the compiler's own scratch needs.
    return min(int(_vmem_capacity_bytes() * 0.4), 48 << 20)


def _vmem_limit_bytes():
    budget = _vmem_tile_budget_bytes()
    if budget <= (30 << 20):
        return None   # default scoped-VMEM limit is already enough (v7x path)
    return min(int(_vmem_capacity_bytes() * 0.7), 100 << 20)


# ----------------------------------------------------------------------------
# Pallas kernel: per-row top-2 (squared) distances + argmin over the desc2 axis.
# grid = (B1_tiles, B2_tiles); B2 is the reduction axis (last, "arbitrary").
# ----------------------------------------------------------------------------
def _top2_kernel(a_ref, bt_ref, bhalf_ref, cols_ref, asq_ref,
                 best_ref, second_ref, idx_ref,
                 s1_sc, s2_sc, bi_sc):
    j = pl.program_id(1)

    @pl.when(j == 0)
    def _():
        s1_sc[...] = jnp.full_like(s1_sc, _BIG)
        s2_sc[...] = jnp.full_like(s2_sc, _BIG)
        bi_sc[...] = jnp.zeros_like(bi_sc)

    ab = jnp.dot(a_ref[...], bt_ref[...],
                 preferred_element_type=jnp.float32)      # MXU, f32 acc (tm,tn)
    # s = 0.5*|b|^2 - a.b  ;  d^2 = |a|^2 + 2*s.  The per-row constant |a|^2,
    # the x2 and the clamp are re-applied only on the (tm,1) finalize: the
    # per-row min / argmin are invariant to them.  Single broadcast subtract.
    s = bhalf_ref[...] - ab                               # (tm, tn)

    m1 = jnp.min(s, axis=1, keepdims=True)                # (tm, 1)
    mask = s == m1                                        # (tm, tn)
    cols = cols_ref[...]                                  # (1, tn) global ids
    first_col = jnp.min(jnp.where(mask, cols, _INT_BIG),
                        axis=1, keepdims=True)            # (tm, 1) int32
    # Fused second-min off the same mask (no serial first_col -> m2 dependence).
    m2 = jnp.min(jnp.where(mask, _BIG, s), axis=1, keepdims=True)
    # Preserve torch.topk tie semantics: duplicate minima in this tile mean the
    # 2nd smallest equals the 1st (one extra XLU reduce, no extra VPU pass).
    ties = jnp.sum(mask, axis=1, keepdims=True)
    m2 = jnp.where(ties > 1, m1, m2)

    o1, o2, oi = s1_sc[...], s2_sc[...], bi_sc[...]
    n1 = jnp.minimum(o1, m1)
    # 2nd smallest of the union {o1, o2} U {m1, m2} (each pair already sorted):
    n2 = jnp.minimum(jnp.maximum(o1, m1), jnp.minimum(o2, m2))
    ni = jnp.where(m1 < o1, first_col, oi)   # strict < keeps first occurrence
    s1_sc[...] = n1
    s2_sc[...] = n2
    bi_sc[...] = ni

    @pl.when(j == pl.num_programs(1) - 1)
    def _():
        a_sq = asq_ref[...]                               # (tm, 1)
        best_ref[...] = jnp.sqrt(jnp.maximum(a_sq + 2.0 * n1, 0.0))
        second_ref[...] = jnp.sqrt(jnp.maximum(a_sq + 2.0 * n2, 0.0))
        idx_ref[...] = ni


# ----------------------------------------------------------------------------
# Tile selection: dtype-, VMEM- and generation-aware.
# ----------------------------------------------------------------------------
def _choose_tiles(B1, B2, D, itemsize):
    Dp = _round_up(D, 128)
    P2 = _round_up(B2, 128)
    row_mult = 16 if itemsize == 2 else 8      # bf16 sublane packing
    budget = _vmem_tile_budget_bytes()

    tm = min(256, _round_up(B1, row_mult))
    # Split the parallel i axis only when the chip actually has >1 TensorCore;
    # on single-TC chips the split just doubles per-step overhead.
    if _num_tensorcores() >= 2 and _round_up(B1, tm) // tm < 2 and B1 > row_mult:
        tm = _round_up(-(-B1 // 2), row_mult)

    def fits(tm_, tn_, n_b_bufs):
        a_blk = 2 * tm_ * Dp * itemsize            # double-buffered desc1 block
        b_blk = n_b_bufs * Dp * tn_ * itemsize     # desc2^T block(s)
        vec = 2 * 2 * tn_ * 4                      # 0.5*|b|^2 + col ids
        inter = 6 * tm_ * tn_ * 4                  # ab/s/mask/selects (f32)
        return a_blk + b_blk + vec + inter <= budget

    # 1) Prefer a single j tile (tn = P2): the desc2^T block index is constant,
    #    so Pallas keeps it VMEM-resident across all i tiles and desc2 is read
    #    from HBM exactly once (kills the dominant bytes_accessed term).
    tm_floor = max(64, row_mult)
    tm_res = tm
    while tm_res > tm_floor and not fits(tm_res, P2, 1):
        tm_res = max(tm_floor, _round_up(tm_res // 2, row_mult))
    if fits(tm_res, P2, 1):
        return tm_res, P2

    # 2) Fall back to tiling the desc2 axis: biggest lane-dense tn that fits
    #    with double-buffered desc2 blocks.
    #    (If DMA ever shows exposed on v5e, pipeline_mode=pl.Buffered(3) on the
    #    desc2^T spec is the next knob; default double buffering kept here.)
    tn = P2
    while tn > 128 and not fits(tm, tn, 2):
        tn = max(128, ((tn // 2) // 128) * 128)
    return tm, tn


@functools.partial(jax.jit, static_argnames=("tm", "tn"))
def _top2_nn_impl(desc1, desc2, tm, tn):
    """Returns (best_dist, second_dist, best_idx) over the desc2 axis."""
    B1, D = desc1.shape
    B2 = desc2.shape[0]
    Dp = _round_up(D, 128)
    P1 = _round_up(B1, tm)
    P2 = _round_up(B2, tn)

    is_bf16 = desc1.dtype == jnp.bfloat16
    compute_dtype = jnp.bfloat16 if is_bf16 else jnp.float32
    itemsize = 2 if is_bf16 else 4
    # TODO(synk): on v5e the f32 MXU path is emulated/slow; casting f32 inputs
    # to bf16 matmul operands (keeping f32 norms/accumulation) is a worthwhile
    # opt-in where matching tolerance allows.

    # Lane-dense, zero-padded operands (zero columns don't change dot/norms).
    d1 = jnp.zeros((P1, Dp), compute_dtype).at[:B1, :D].set(
        desc1.astype(compute_dtype))
    d2t = jnp.zeros((Dp, P2), compute_dtype).at[:D, :B2].set(
        desc2.astype(compute_dtype).T)
    # Row norms precomputed once; 0.5 pre-folded into b so the tile math is a
    # single subtract.  Padded desc2 columns get a huge value (never win).
    a_sq = jnp.zeros((P1, 1), jnp.float32).at[:B1, 0].set(
        jnp.sum(desc1.astype(jnp.float32) ** 2, axis=1))
    b_half = jnp.full((1, P2), _PAD_BHALF, jnp.float32).at[0, :B2].set(
        0.5 * jnp.sum(desc2.astype(jnp.float32) ** 2, axis=1))
    col_ids = lax.broadcasted_iota(jnp.int32, (1, P2), 1)

    n_i = P1 // tm
    n_j = P2 // tn
    d2_hbm_reads = 1 if n_j == 1 else n_i   # resident vs re-streamed per i tile

    out_shapes = (
        jax.ShapeDtypeStruct((P1, 1), jnp.float32),
        jax.ShapeDtypeStruct((P1, 1), jnp.float32),
        jax.ShapeDtypeStruct((P1, 1), jnp.int32),
    )
    best, second, idx = pl.pallas_call(
        _top2_kernel,
        out_shape=out_shapes,
        grid_spec=pltpu.PrefetchScalarGridSpec(
            num_scalar_prefetch=0,
            grid=(n_i, n_j),
            in_specs=[
                pl.BlockSpec((tm, Dp), lambda i, j: (i, 0)),   # desc1 rows
                pl.BlockSpec((Dp, tn), lambda i, j: (0, j)),   # desc2^T cols
                pl.BlockSpec((1, tn), lambda i, j: (0, j)),    # 0.5*|b|^2
                pl.BlockSpec((1, tn), lambda i, j: (0, j)),    # global col ids
                pl.BlockSpec((tm, 1), lambda i, j: (i, 0)),    # |a|^2 (finalize)
            ],
            out_specs=[
                pl.BlockSpec((tm, 1), lambda i, j: (i, 0)),
                pl.BlockSpec((tm, 1), lambda i, j: (i, 0)),
                pl.BlockSpec((tm, 1), lambda i, j: (i, 0)),
            ],
            scratch_shapes=[
                pltpu.VMEM((tm, 1), jnp.float32),
                pltpu.VMEM((tm, 1), jnp.float32),
                pltpu.VMEM((tm, 1), jnp.int32),
            ],
        ),
        compiler_params=pltpu.CompilerParams(
            dimension_semantics=("parallel", "arbitrary"),
            vmem_limit_bytes=_vmem_limit_bytes()),
        cost_estimate=pl.CostEstimate(
            flops=2 * P1 * P2 * Dp,
            transcendentals=0,
            bytes_accessed=(itemsize * (P1 * Dp + Dp * P2 * d2_hbm_reads)
                            + 4 * (2 * P2 * d2_hbm_reads + 4 * P1))),
    )(d1, d2t, b_half, col_ids, a_sq)
    return best[:B1, 0], second[:B1, 0], idx[:B1, 0]


def _top2_nn(desc1, desc2):
    itemsize = 2 if desc1.dtype == jnp.bfloat16 else 4
    tm, tn = _choose_tiles(desc1.shape[0], desc2.shape[0], desc1.shape[1],
                           itemsize)
    return _top2_nn_impl(desc1, desc2, tm=tm, tn=tn)


# ----------------------------------------------------------------------------
# Host-side matching logic (dynamic-size compaction is data dependent, so it
# stays in numpy; indices are int32 since JAX x64 is off by default).
# ----------------------------------------------------------------------------
def _match_nn(desc1, desc2):
    best, _, idx2 = _top2_nn(desc1, desc2)
    best = np.asarray(best)
    idx2 = np.asarray(idx2)
    idx1 = np.arange(idx2.shape[0], dtype=np.int32)
    matches = np.stack([idx1, idx2], axis=1)
    return best.reshape(-1, 1), matches.reshape(-1, 2)


def _match_snn(desc1, desc2, th):
    assert desc2.shape[0] >= 2
    best, second, idx2 = _top2_nn(desc1, desc2)
    best = np.asarray(best)
    second = np.asarray(second)
    idx2 = np.asarray(idx2)
    ratio = best / second
    mask = ratio <= th
    idx1 = np.arange(idx2.shape[0], dtype=np.int32)[mask]
    matches = np.stack([idx1, idx2[mask]], axis=1)
    return ratio[mask].reshape(-1, 1), matches.reshape(-1, 2)


def _match_mnn(desc1, desc2):
    # TODO(synk): a single-pass kernel emitting column-direction min/argmin
    # partials (out BlockSpec ((1, tn), lambda i,j:(i,j))) would halve MXU/HBM
    # work for mnn/smnn; needs a (num_i_tiles, P2) partial layout compatible
    # with the (8,128) block constraint, so left for a follow-up.
    B1, B2 = desc1.shape[0], desc2.shape[0]
    d12, _, idxs_in_2 = _top2_nn(desc1, desc2)   # min over dim=1
    d21, _, idxs_in_1 = _top2_nn(desc2, desc1)   # min over dim=0 (of dm)
    d12, idxs_in_2 = np.asarray(d12), np.asarray(idxs_in_2)
    d21, idxs_in_1 = np.asarray(d21), np.asarray(idxs_in_1)
    ms = min(B1, B2)
    minsize = np.arange(ms, dtype=np.int32)
    if B1 <= B2:
        mutual = minsize == idxs_in_1[idxs_in_2][:ms]
        matches = np.stack([minsize, idxs_in_2[:ms]], axis=1)[mutual]
        dists = d12[:ms][mutual]
    else:
        mutual = minsize == idxs_in_2[idxs_in_1][:ms]
        matches = np.stack([idxs_in_1[:ms], minsize], axis=1)[mutual]
        dists = d21[:ms][mutual]
    return dists.reshape(-1, 1), matches.reshape(-1, 2)


def _match_smnn(desc1, desc2, th):
    assert desc1.shape[0] >= 2 and desc2.shape[0] >= 2
    dists1, idx1 = _match_snn(desc1, desc2, th)
    dists2, idx2 = _match_snn(desc2, desc1, th)
    if len(dists1) > 0 and len(dists2) > 0:
        idx2 = idx2[:, ::-1]
        idxs_dm = np.abs(idx1[:, None, :].astype(np.float32)
                         - idx2[None, :, :].astype(np.float32)).sum(-1)
        mutual1 = idxs_dm.min(axis=1) < 1e-8
        mutual2 = idxs_dm.min(axis=0) < 1e-8
        good1 = idx1[mutual1]
        good2 = idx2[mutual2]
        d1g = dists1[mutual1, 0]
        d2g = dists2[mutual2, 0]
        o1 = np.argsort(good1[:, 0], kind="stable")
        o2 = np.argsort(good2[:, 0], kind="stable")
        good1 = good1[o1]
        match_dists = np.maximum(d1g[o1], d2g[o2])
        return match_dists.reshape(-1, 1), good1.reshape(-1, 2)
    return (np.empty((0, 1), np.float32), np.empty((0, 2), np.int32))


class DescriptorMatcher:
    """JAX/Pallas port of kornia.feature.DescriptorMatcher."""
    known_modes = ["nn", "mnn", "snn", "smnn"]

    def __init__(self, match_mode: str = "snn", th: float = 0.8):
        m = match_mode.lower()
        if m not in self.known_modes:
            raise NotImplementedError(
                f"{match_mode} is not supported. Try one of {self.known_modes}")
        self.match_mode = m
        self.th = th

    def __call__(self, desc1, desc2):
        if self.match_mode == "nn":
            return _match_nn(desc1, desc2)
        if self.match_mode == "mnn":
            return _match_mnn(desc1, desc2)
        if self.match_mode == "snn":
            return _match_snn(desc1, desc2, self.th)
        if self.match_mode == "smnn":
            return _match_smnn(desc1, desc2, self.th)
        raise NotImplementedError


if __name__ == "__main__":
    key = jax.random.PRNGKey(0)
    k1, k2 = jax.random.split(key)
    B1, B2, D = 100, 96, 64
    desc1 = jax.random.normal(k1, (B1, D), dtype=jnp.float32)
    desc2 = jax.random.normal(k2, (B2, D), dtype=jnp.float32)

    # --- run the kernel hot path and block on it ---
    best, second, idx = _top2_nn(desc1, desc2)
    jax.block_until_ready((best, second, idx))

    # --- reference check (pure JAX/numpy) ---
    a_sq = jnp.sum(desc1 * desc1, axis=1, keepdims=True)
    b_sq = jnp.sum(desc2 * desc2, axis=1)[None, :]
    dm = jnp.sqrt(jnp.maximum(a_sq + b_sq - 2.0 * desc1 @ desc2.T, 0.0))
    dm = np.asarray(dm)
    ref_sorted = np.sort(dm, axis=1)
    assert np.allclose(np.asarray(best), ref_sorted[:, 0], atol=1e-2)
    assert np.allclose(np.asarray(second), ref_sorted[:, 1], atol=1e-2)
    assert np.allclose(dm[np.arange(B1), np.asarray(idx)],
                       np.asarray(best), atol=1e-2)

    # --- bf16 MXU path smoke test (no strict tolerance; just compile/run) ---
    bb, bs, bi = _top2_nn(desc1.astype(jnp.bfloat16), desc2.astype(jnp.bfloat16))
    jax.block_until_ready((bb, bs, bi))

    # --- module forward (default: snn, th=0.8) ---
    matcher = DescriptorMatcher("snn", th=0.8)
    dists, matches = matcher(desc1, desc2)
    assert dists.shape[1] == 1 and matches.shape[1] == 2
    assert dists.shape[0] == matches.shape[0] <= B1

    # exercise the other modes once as well
    for mode in ("nn", "mnn", "smnn"):
        d, m = DescriptorMatcher(mode, th=0.95)(desc1, desc2)
        assert d.shape[0] == m.shape[0]

    print("KERNEL_OK")
</pallas_src>

<mosaic_0001>
module attributes {stable_mosaic.version = 11 : i64} {
  func.func @_top2_kernel(%arg0: i32, %arg1: i32, %arg2: memref<104x128xf32, #tpu.memory_space<vmem>>, %arg3: memref<128x128xf32, #tpu.memory_space<vmem>>, %arg4: memref<1x128xf32, #tpu.memory_space<vmem>>, %arg5: memref<1x128xi32, #tpu.memory_space<vmem>>, %arg6: memref<104x1xf32, #tpu.memory_space<vmem>>, %arg7: memref<104x1xf32, #tpu.memory_space<vmem>>, %arg8: memref<104x1xf32, #tpu.memory_space<vmem>>, %arg9: memref<104x1xi32, #tpu.memory_space<vmem>>, %arg10: memref<104x1xf32, #tpu.memory_space<vmem>>, %arg11: memref<104x1xf32, #tpu.memory_space<vmem>>, %arg12: memref<104x1xi32, #tpu.memory_space<vmem>>) attributes {dimension_semantics = [#tpu.dimension_semantics<parallel>, #tpu.dimension_semantics<arbitrary>], iteration_bounds = array<i64: 1, 1>, scalar_prefetch = 0 : i64, scratch_operands = 3 : i64, tpu.core_type = #tpu.core_type<tc>, window_params = [{transform_indices = @transform_0, window_bounds = array<i64: 104, 128>}, {transform_indices = @transform_1, window_bounds = array<i64: 128, 128>}, {transform_indices = @transform_2, window_bounds = array<i64: 1, 128>}, {transform_indices = @transform_3, window_bounds = array<i64: 1, 128>}, {transform_indices = @transform_4, window_bounds = array<i64: 104, 1>}, {transform_indices = @transform_5, window_bounds = array<i64: 104, 1>}, {transform_indices = @transform_6, window_bounds = array<i64: 104, 1>}, {transform_indices = @transform_7, window_bounds = array<i64: 104, 1>}]} {
    %c0_i32 = arith.constant 0 : i32
    %0 = arith.cmpi eq, %arg1, %c0_i32 : i32
    %1 = arith.extui %0 : i1 to i32
    %c0_i32_0 = arith.constant 0 : i32
    %2 = arith.cmpi ne, %1, %c0_i32_0 : i32
    scf.if %2 {
      %cst_27 = arith.constant 1.000000e+30 : f32
      %45 = vector.broadcast %cst_27 : f32 to vector<104x1xf32>
      %c0_28 = arith.constant 0 : index
      %c0_29 = arith.constant 0 : index
      %46 = vector.load %arg10[%c0_28, %c0_29] : memref<104x1xf32, #tpu.memory_space<vmem>>, vector<104x1xf32>
      tpu.vector_store %arg10[%c0_28, %c0_29], %45 {strides = array<i32>} : memref<104x1xf32, #tpu.memory_space<vmem>>, vector<104x1xf32>,
      %cst_30 = arith.constant 1.000000e+30 : f32
      %47 = vector.broadcast %cst_30 : f32 to vector<104x1xf32>
      %c0_31 = arith.constant 0 : index
      %c0_32 = arith.constant 0 : index
      %48 = vector.load %arg11[%c0_31, %c0_32] : memref<104x1xf32, #tpu.memory_space<vmem>>, vector<104x1xf32>
      tpu.vector_store %arg11[%c0_31, %c0_32], %47 {strides = array<i32>} : memref<104x1xf32, #tpu.memory_space<vmem>>, vector<104x1xf32>,
      %c0_i32_33 = arith.constant 0 : i32
      %49 = vector.broadcast %c0_i32_33 : i32 to vector<104x1xi32>
      %c0_34 = arith.constant 0 : index
      %c0_35 = arith.constant 0 : index
      %50 = vector.load %arg12[%c0_34, %c0_35] : memref<104x1xi32, #tpu.memory_space<vmem>>, vector<104x1xi32>
      tpu.vector_store %arg12[%c0_34, %c0_35], %49 {strides = array<i32>} : memref<104x1xi32, #tpu.memory_space<vmem>>, vector<104x1xi32>,
    } else {
    }
    %c0 = arith.constant 0 : index
    %c0_1 = arith.constant 0 : index
    %3 = vector.load %arg2[%c0, %c0_1] : memref<104x128xf32, #tpu.memory_space<vmem>>, vector<104x128xf32>
    %c0_2 = arith.constant 0 : index
    %c0_3 = arith.constant 0 : index
    %4 = vector.load %arg3[%c0_2, %c0_3] : memref<128x128xf32, #tpu.memory_space<vmem>>, vector<128x128xf32>
    %cst = arith.constant dense<0.000000e+00> : vector<104x128xf32>
    %5 = tpu.matmul %3, %4, %cst {dimension_numbers = #tpu.dot_dimension_numbers<[1], [0], [0], [1], [0, 0, 1, 1], [], []>} : vector<104x128xf32>, vector<128x128xf32>, vector<104x128xf32> -> vector<104x128xf32>
    %c0_4 = arith.constant 0 : index
    %c0_5 = arith.constant 0 : index
    %6 = vector.load %arg4[%c0_4, %c0_5] : memref<1x128xf32, #tpu.memory_space<vmem>>, vector<1x128xf32>
    %7 = vector.broadcast %6 : vector<1x128xf32> to vector<104x128xf32>
    %8 = arith.subf %7, %5 : vector<104x128xf32>
    %cst_6 = arith.constant dense<0x7F800000> : vector<104xf32>
    %9 = vector.multi_reduction <minimumf>, %8, %cst_6 [1] : vector<104x128xf32> to vector<104xf32>
    %10 = vector.shape_cast %9 : vector<104xf32> to vector<104x1xf32>
    %11 = vector.broadcast %10 : vector<104x1xf32> to vector<104x128xf32>
    %12 = arith.cmpf oeq, %8, %11 : vector<104x128xf32>
    %c0_7 = arith.constant 0 : index
    %c0_8 = arith.constant 0 : index
    %13 = vector.load %arg5[%c0_7, %c0_8] : memref<1x128xi32, #tpu.memory_space<vmem>>, vector<1x128xi32>
    %c1073741824_i32 = arith.constant 1073741824 : i32
    %14 = vector.shape_cast %13 : vector<1x128xi32> to vector<1x128xi32>
    %15 = vector.broadcast %14 : vector<1x128xi32> to vector<104x128xi32>
    %16 = vector.broadcast %c1073741824_i32 : i32 to vector<104x128xi32>
    %17 = arith.select %12, %15, %16 : vector<104x128xi1>, vector<104x128xi32>
    %cst_9 = arith.constant dense<2147483647> : vector<104xi32>
    %18 = vector.multi_reduction <minsi>, %17, %cst_9 [1] : vector<104x128xi32> to vector<104xi32>
    %19 = vector.shape_cast %18 : vector<104xi32> to vector<104x1xi32>
    %cst_10 = arith.constant 1.000000e+30 : f32
    %20 = vector.broadcast %cst_10 : f32 to vector<104x128xf32>
    %21 = arith.select %12, %20, %8 : vector<104x128xi1>, vector<104x128xf32>
    %cst_11 = arith.constant dense<0x7F800000> : vector<104xf32>
    %22 = vector.multi_reduction <minimumf>, %21, %cst_11 [1] : vector<104x128xf32> to vector<104xf32>
    %23 = vector.shape_cast %22 : vector<104xf32> to vector<104x1xf32>
    %24 = arith.extui %12 : vector<104x128xi1> to vector<104x128xi32>
    %cst_12 = arith.constant dense<0> : vector<104xi32>
    %25 = vector.multi_reduction <add>, %24, %cst_12 [1] : vector<104x128xi32> to vector<104xi32>
    %26 = vector.shape_cast %25 : vector<104xi32> to vector<104x1xi32>
    %c1_i32 = arith.constant 1 : i32
    %27 = vector.broadcast %c1_i32 : i32 to vector<104x1xi32>
    %28 = arith.cmpi sgt, %26, %27 : vector<104x1xi32>
    %29 = arith.select %28, %10, %23 : vector<104x1xi1>, vector<104x1xf32>
    %c0_13 = arith.constant 0 : index
    %c0_14 = arith.constant 0 : index
    %30 = vector.load %arg10[%c0_13, %c0_14] : memref<104x1xf32, #tpu.memory_space<vmem>>, vector<104x1xf32>
    %c0_15 = arith.constant 0 : index
    %c0_16 = arith.constant 0 : index
    %31 = vector.load %arg11[%c0_15, %c0_16] : memref<104x1xf32, #tpu.memory_space<vmem>>, vector<104x1xf32>
    %c0_17 = arith.constant 0 : index
    %c0_18 = arith.constant 0 : index
    %32 = vector.load %arg12[%c0_17, %c0_18] : memref<104x1xi32, #tpu.memory_space<vmem>>, vector<104x1xi32>
    %33 = arith.minimumf %30, %10 : vector<104x1xf32>
    %34 = arith.maximumf %30, %10 : vector<104x1xf32>
    %35 = arith.minimumf %31, %29 : vector<104x1xf32>
    %36 = arith.minimumf %34, %35 : vector<104x1xf32>
    %37 = arith.cmpf olt, %10, %30 : vector<104x1xf32>
    %38 = arith.select %37, %19, %32 : vector<104x1xi1>, vector<104x1xi32>
    %c0_19 = arith.constant 0 : index
    %c0_20 = arith.constant 0 : index
    %39 = vector.load %arg10[%c0_19, %c0_20] : memref<104x1xf32, #tpu.memory_space<vmem>>, vector<104x1xf32>
    tpu.vector_store %arg10[%c0_19, %c0_20], %33 {strides = array<i32>} : memref<104x1xf32, #tpu.memory_space<vmem>>, vector<104x1xf32>,
    %c0_21 = arith.constant 0 : index
    %c0_22 = arith.constant 0 : index
    %40 = vector.load %arg11[%c0_21, %c0_22] : memref<104x1xf32, #tpu.memory_space<vmem>>, vector<104x1xf32>
    tpu.vector_store %arg11[%c0_21, %c0_22], %36 {strides = array<i32>} : memref<104x1xf32, #tpu.memory_space<vmem>>, vector<104x1xf32>,
    %c0_23 = arith.constant 0 : index
    %c0_24 = arith.constant 0 : index
    %41 = vector.load %arg12[%c0_23, %c0_24] : memref<104x1xi32, #tpu.memory_space<vmem>>, vector<104x1xi32>
    tpu.vector_store %arg12[%c0_23, %c0_24], %38 {strides = array<i32>} : memref<104x1xi32, #tpu.memory_space<vmem>>, vector<104x1xi32>,
    %c0_i32_25 = arith.constant 0 : i32
    %42 = arith.cmpi eq, %arg1, %c0_i32_25 : i32
    %43 = arith.extui %42 : i1 to i32
    %c0_i32_26 = arith.constant 0 : i32
    %44 = arith.cmpi ne, %43, %c0_i32_26 : i32
    scf.if %44 {
      %c0_27 = arith.constant 0 : index
      %c0_28 = arith.constant 0 : index
      %45 = vector.load %arg6[%c0_27, %c0_28] : memref<104x1xf32, #tpu.memory_space<vmem>>, vector<104x1xf32>
      %cst_29 = arith.constant 2.000000e+00 : f32
      %46 = vector.broadcast %cst_29 : f32 to vector<104x1xf32>
      %47 = arith.mulf %46, %33 : vector<104x1xf32>
      %48 = arith.addf %45, %47 : vector<104x1xf32>
      %cst_30 = arith.constant 0.000000e+00 : f32
      %49 = vector.broadcast %cst_30 : f32 to vector<104x1xf32>
      %50 = arith.maximumf %48, %49 : vector<104x1xf32>
      %51 = math.sqrt %50 : vector<104x1xf32>
      %c0_31 = arith.constant 0 : index
      %c0_32 = arith.constant 0 : index
      %52 = vector.load %arg7[%c0_31, %c0_32] : memref<104x1xf32, #tpu.memory_space<vmem>>, vector<104x1xf32>
      tpu.vector_store %arg7[%c0_31, %c0_32], %51 {strides = array<i32>} : memref<104x1xf32, #tpu.memory_space<vmem>>, vector<104x1xf32>,
      %cst_33 = arith.constant 2.000000e+00 : f32
      %53 = vector.broadcast %cst_33 : f32 to vector<104x1xf32>
      %54 = arith.mulf %53, %36 : vector<104x1xf32>
      %55 = arith.addf %45, %54 : vector<104x1xf32>
      %cst_34 = arith.constant 0.000000e+00 : f32
      %56 = vector.broadcast %cst_34 : f32 to vector<104x1xf32>
      %57 = arith.maximumf %55, %56 : vector<104x1xf32>
      %58 = math.sqrt %57 : vector<104x1xf32>
      %c0_35 = arith.constant 0 : index
      %c0_36 = arith.constant 0 : index
      %59 = vector.load %arg8[%c0_35, %c0_36] : memref<104x1xf32, #tpu.memory_space<vmem>>, vector<104x1xf32>
      tpu.vector_store %arg8[%c0_35, %c0_36], %58 {strides = array<i32>} : memref<104x1xf32, #tpu.memory_space<vmem>>, vector<104x1xf32>,
      %c0_37 = arith.constant 0 : index
      %c0_38 = arith.constant 0 : index
      %60 = vector.load %arg9[%c0_37, %c0_38] : memref<104x1xi32, #tpu.memory_space<vmem>>, vector<104x1xi32>
      tpu.vector_store %arg9[%c0_37, %c0_38], %38 {strides = array<i32>} : memref<104x1xi32, #tpu.memory_space<vmem>>, vector<104x1xi32>,
    } else {
    }
    return
  }
  func.func @transform_0(%arg0: i32, %arg1: i32) -> (i32, i32) {
    %c0_i32 = arith.constant 0 : i32
    %c0_i32_0 = arith.constant 0 : i32
    return %arg0, %c0_i32 : i32, i32
  }
  func.func @transform_1(%arg0: i32, %arg1: i32) -> (i32, i32) {
    %c0_i32 = arith.constant 0 : i32
    %c0_i32_0 = arith.constant 0 : i32
    return %c0_i32, %arg1 : i32, i32
  }
  func.func @transform_2(%arg0: i32, %arg1: i32) -> (i32, i32) {
    %c0_i32 = arith.constant 0 : i32
    %c0_i32_0 = arith.constant 0 : i32
    return %c0_i32, %arg1 : i32, i32
  }
  func.func @transform_3(%arg0: i32, %arg1: i32) -> (i32, i32) {
    %c0_i32 = arith.constant 0 : i32
    %c0_i32_0 = arith.constant 0 : i32
    return %c0_i32, %arg1 : i32, i32
  }
  func.func @transform_4(%arg0: i32, %arg1: i32) -> (i32, i32) {
    %c0_i32 = arith.constant 0 : i32
    %c0_i32_0 = arith.constant 0 : i32
    return %arg0, %c0_i32 : i32, i32
  }
  func.func @transform_5(%arg0: i32, %arg1: i32) -> (i32, i32) {
    %c0_i32 = arith.constant 0 : i32
    %c0_i32_0 = arith.constant 0 : i32
    return %arg0, %c0_i32 : i32, i32
  }
  func.func @transform_6(%arg0: i32, %arg1: i32) -> (i32, i32) {
    %c0_i32 = arith.constant 0 : i32
    %c0_i32_0 = arith.constant 0 : i32
    return %arg0, %c0_i32 : i32, i32
  }
  func.func @transform_7(%arg0: i32, %arg1: i32) -> (i32, i32) {
    %c0_i32 = arith.constant 0 : i32
    %c0_i32_0 = arith.constant 0 : i32
    return %arg0, %c0_i32 : i32, i32
  }
}

</mosaic_0001>

<bundles_post_ra>
// kernel: _top2_nn_impl.1
= control target key start
LH: loop header
LB: loop body
LE: loop exit
PB: predicated region body
PF: predicated region fallthrough
CT: control target
= control target key end

     0   :  { %v1403_v0 = vmov 0.0|0.0   ;;  %vm1404_vm0 = vmmov 0   ;;  %v1405_v6 = vmov 0.0   ;;  %vm27_vm1 = vcmask 7168   ;;  %s2852_s1 = inlined_call_operand.vmem [shape: f32[128,128], index: 1, kind: input, shape index: {}]   ;;  %s2853_s0 = inlined_call_operand.vmem [shape: f32[104,128], index: 0, kind: input, shape index: {}]   ;;  %s2854_s2 = inlined_call_operand.vmem [shape: f32[1,128], index: 2, kind: input, shape index: {}]   ;;  %s2855_s3 = inlined_call_operand.vmem [shape: s32[1,128], index: 3, kind: input, shape index: {}]   ;;  %s2856_s4 = inlined_call_operand.vmem [shape: f32[104,1], index: 4, kind: input, shape index: {}]   ;;  %s2857_s5 = inlined_call_operand.vmem [shape: f32[104,1], index: 5, kind: output, shape index: {0}]   ;;  %s2858_s6 = inlined_call_operand.vmem [shape: f32[104,1], index: 6, kind: output, shape index: {1}]   ;;  %s2859_s7 = inlined_call_operand.vmem [shape: s32[104,1], index: 7, kind: output, shape index: {2}]  }
   0x1   :  { %1305 = vmatprep.subr.bf16.mxu0 %v1403_v0  ;;  %1329 = vmatprep.subr.bf16.mxu1 %v1403_v0  ;;  %v80_v1 = vld [vmem:[%s2852_s1] sm:$0xff]  ;;  %v81_v2 = vld [vmem:[%s2852_s1 + $0x8] sm:$0xff]  ;;  %v82_v3 = vld [vmem:[%s2852_s1 + $0x10] sm:$0xff]  ;;  %v1406_v39 = vmov 1e+30  }
   0x2   :  { %v1306_v4 = vpack.c.bf16 %v81_v2, %v80_v1  ;;  %v83_v5 = vld [vmem:[%s2852_s1 + $0x18] sm:$0xff]  ;;  %1266 = vmatprep.mubr.msk.f32.mxu0 %vm1404_vm0, %v1405_v6  ;;  %1287 = vmatprep.mubr.msk.f32.mxu1 %vm1404_vm0, %v1405_v6  ;;  %v84_v8 = vld [vmem:[%s2852_s1 + $0x20] sm:$0xff]  ;;  %v85_v9 = vld [vmem:[%s2852_s1 + $0x28] sm:$0xff]  ;;  %35 = vst.msk [vmem:[#allocation2 + $0x38] sm:$0xff] %vm27_vm1, %v1406_v39 }
   0x3   :  { %v1309_v7 = vpack.c.bf16 %v83_v5, %v82_v3  ;;  %v1312_v10 = vpack.c.bf16 %v85_v9, %v84_v8  ;;  %v86_v11 = vld [vmem:[%s2852_s1 + $0x30] sm:$0xff]  ;;  %v87_v12 = vld [vmem:[%s2852_s1 + $0x38] sm:$0xff]  ;;  %v88_v14 = vld [vmem:[%s2852_s1 + $0x40] sm:$0xff]  ;;  %28 = vst.msk [vmem:[#allocation2] sm:$0xff] %vm27_vm1, %v1406_v39 }
   0x4   :  { %1307 = vmatpush3.bf16.msra.mxu0 %v1306_v4  ;;  %1337 = vmatpush3.bf16.msra.mxu1 %v1306_v4  ;;  %v1315_v13 = vpack.c.bf16 %v87_v12, %v86_v11  ;;  %v89_v15 = vld [vmem:[%s2852_s1 + $0x48] sm:$0xff]  ;;  %v90_v17 = vld [vmem:[%s2852_s1 + $0x50] sm:$0xff]  ;;  %v91_v18 = vld [vmem:[%s2852_s1 + $0x58] sm:$0xff]  ;;  %29 = vst.msk [vmem:[#allocation2 + $0x8] sm:$0xff] %vm27_vm1, %v1406_v39 }
   0x5   :  { %1308 = vmatprep.subr.bf16.mxu0 %v1403_v0  ;;  %1330 = vmatprep.subr.bf16.mxu1 %v1403_v0  ;;  %v1318_v16 = vpack.c.bf16 %v89_v15, %v88_v14  ;;  %v1321_v19 = vpack.c.bf16 %v91_v18, %v90_v17  ;;  %v92_v20 = vld [vmem:[%s2852_s1 + $0x60] sm:$0xff]  ;;  %v93_v21 = vld [vmem:[%s2852_s1 + $0x68] sm:$0xff]  ;;  %v94_v23 = vld [vmem:[%s2852_s1 + $0x70] sm:$0xff]  ;;  %30 = vst.msk [vmem:[#allocation2 + $0x10] sm:$0xff] %vm27_vm1, %v1406_v39 }
   0x6   :  { %v1324_v22 = vpack.c.bf16 %v93_v21, %v92_v20  ;;  %v95_v24 = vld [vmem:[%s2852_s1 + $0x78] sm:$0xff]  ;;  %v67_v26 = vld [vmem:[%s2853_s0] sm:$0xff]  ;;  %v68_v28 = vld [vmem:[%s2853_s0 + $0x8] sm:$0xff]  ;;  %31 = vst.msk [vmem:[#allocation2 + $0x18] sm:$0xff] %vm27_vm1, %v1406_v39 }
   0x7   :  { %v1327_v25 = vpack.c.bf16 %v95_v24, %v94_v23  ;;  %v74_v27 = vld [vmem:[%s2853_s0 + $0x38] sm:$0xff]  ;;  %v75_v29 = vld [vmem:[%s2853_s0 + $0x40] sm:$0xff]  ;;  %v69_v30 = vld [vmem:[%s2853_s0 + $0x10] sm:$0xff]  ;;  %32 = vst.msk [vmem:[#allocation2 + $0x20] sm:$0xff] %vm27_vm1, %v1406_v39 }
   0x8   :  { %1310 = vmatpush3.bf16.msra.mxu0 %v1309_v7  ;;  %1338 = vmatpush3.bf16.msra.mxu1 %v1309_v7  ;;  %v76_v31 = vld [vmem:[%s2853_s0 + $0x48] sm:$0xff]  ;;  %v70_v32 = vld [vmem:[%s2853_s0 + $0x18] sm:$0xff]  ;;  %v77_v33 = vld [vmem:[%s2853_s0 + $0x50] sm:$0xff]  ;;  %33 = vst.msk [vmem:[#allocation2 + $0x28] sm:$0xff] %vm27_vm1, %v1406_v39 }
   0x9   :  { %1311 = vmatprep.subr.bf16.mxu0 %v1403_v0  ;;  %1331 = vmatprep.subr.bf16.mxu1 %v1403_v0  ;;  %v71_v34 = vld [vmem:[%s2853_s0 + $0x20] sm:$0xff]  ;;  %v78_v35 = vld [vmem:[%s2853_s0 + $0x58] sm:$0xff]  ;;  %v72_v36 = vld [vmem:[%s2853_s0 + $0x28] sm:$0xff]  ;;  %34 = vst.msk [vmem:[#allocation2 + $0x30] sm:$0xff] %vm27_vm1, %v1406_v39 }
   0xa   :  { %v79_v37 = vld [vmem:[%s2853_s0 + $0x60] sm:$0xff]  ;;  %v73_v38 = vld [vmem:[%s2853_s0 + $0x30] sm:$0xff]  ;;  %36 = vst.msk [vmem:[#allocation2 + $0x40] sm:$0xff] %vm27_vm1, %v1406_v39  ;;  %37 = vst.msk [vmem:[#allocation2 + $0x48] sm:$0xff] %vm27_vm1, %v1406_v39 }
   0xb   :  { %38 = vst.msk [vmem:[#allocation2 + $0x50] sm:$0xff] %vm27_vm1, %v1406_v39  ;;  %39 = vst.msk [vmem:[#allocation2 + $0x58] sm:$0xff] %vm27_vm1, %v1406_v39  ;;  %v1590_v40 = vld [vmem:[%s2854_s2] ss:$0 sm:$0xff]  ;;  %v1670_v17 = vld [vmem:[#allocation2 + $0x38] sm:$0xff] }
   0xc   :  { %1313 = vmatpush3.bf16.msra.mxu0 %v1312_v10  ;;  %1339 = vmatpush3.bf16.msra.mxu1 %v1312_v10  ;;  %40 = vst.msk [vmem:[#allocation2 + $0x60] sm:$0xff] %vm27_vm1, %v1406_v39  ;;  %41 = vst.msk [vmem:[#allocation3] sm:$0xff] %vm27_vm1, %v1406_v39  ;;  %v1672_v18 = vld [vmem:[#allocation2] sm:$0xff]  ;;  %v1691_v24 = vld [vmem:[#allocation2 + $0x8] sm:$0xff] }
   0xd   :  { %1314 = vmatprep.subr.bf16.mxu0 %v1403_v0  ;;  %1332 = vmatprep.subr.bf16.mxu1 %v1403_v0  ;;  %42 = vst.msk [vmem:[#allocation3 + $0x8] sm:$0xff] %vm27_vm1, %v1406_v39  ;;  %43 = vst.msk [vmem:[#allocation3 + $0x10] sm:$0xff] %vm27_vm1, %v1406_v39  ;;  %v1681_v21 = vld [vmem:[%s2855_s3] ss:$0 sm:$0xff] }
   0xe   :  { %44 = vst.msk [vmem:[#allocation3 + $0x18] sm:$0xff] %vm27_vm1, %v1406_v39  ;;  %45 = vst.msk [vmem:[#allocation3 + $0x20] sm:$0xff] %vm27_vm1, %v1406_v39 }
   0xf   :  { %46 = vst.msk [vmem:[#allocation3 + $0x28] sm:$0xff] %vm27_vm1, %v1406_v39  ;;  %47 = vst.msk [vmem:[#allocation3 + $0x30] sm:$0xff] %vm27_vm1, %v1406_v39 }
  0x10   :  { %1316 = vmatpush3.bf16.msra.mxu0 %v1315_v13  ;;  %1340 = vmatpush3.bf16.msra.mxu1 %v1315_v13  ;;  %48 = vst.msk [vmem:[#allocation3 + $0x38] sm:$0xff] %vm27_vm1, %v1406_v39  ;;  %49 = vst.msk [vmem:[#allocation3 + $0x40] sm:$0xff] %vm27_vm1, %v1406_v39 }
  0x11   :  { %1317 = vmatprep.subr.bf16.mxu0 %v1403_v0  ;;  %1333 = vmatprep.subr.bf16.mxu1 %v1403_v0  ;;  %50 = vst.msk [vmem:[#allocation3 + $0x48] sm:$0xff] %vm27_vm1, %v1406_v39  ;;  %51 = vst.msk [vmem:[#allocation3 + $0x50] sm:$0xff] %vm27_vm1, %v1406_v39 }
  0x12   :  { %52 = vst.msk [vmem:[#allocation3 + $0x58] sm:$0xff] %vm27_vm1, %v1406_v39  ;;  %53 = vst.msk [vmem:[#allocation3 + $0x60] sm:$0xff] %vm27_vm1, %v1406_v39 }
  0x13   :  { %2941 = vst [vmem:[#allocation6_spill] sm:$0xff] %v1670_v17  ;;  %2942 = vst [vmem:[#allocation7_spill] sm:$0xff] %v1672_v18 }
  0x14   :  { %1319 = vmatpush3.bf16.msra.mxu0 %v1318_v16  ;;  %1341 = vmatpush3.bf16.msra.mxu1 %v1318_v16  ;;  %2944 = vst [vmem:[#allocation9_spill] sm:$0xff] %v1691_v24 }
  0x15   :  { %1320 = vmatprep.subr.bf16.mxu0 %v1403_v0  ;;  %1334 = vmatprep.subr.bf16.mxu1 %v1403_v0 }
  0x18   :  { %1322 = vmatpush3.bf16.msra.mxu0 %v1321_v19  ;;  %1342 = vmatpush3.bf16.msra.mxu1 %v1321_v19 }
  0x19   :  { %1323 = vmatprep.subr.bf16.mxu0 %v1403_v0  ;;  %1335 = vmatprep.subr.bf16.mxu1 %v1403_v0 }
  0x1c   :  { %1325 = vmatpush3.bf16.msra.mxu0 %v1324_v22  ;;  %1343 = vmatpush3.bf16.msra.mxu1 %v1324_v22 }
  0x1d   :  { %1326 = vmatprep.subr.bf16.mxu0 %v1403_v0  ;;  %1336 = vmatprep.subr.bf16.mxu1 %v1403_v0 }
  0x20   :  { %1328 = vmatpush3.bf16.msra.mxu0 %v1327_v25  ;;  %1344 = vmatpush3.bf16.msra.mxu1 %v1327_v25 }
  0x23   :  { %1267 = vmatmul.mubr.f32.vlgmr.msra.gmra.mrb[0].mxu0 %v67_v26  ;;  %1288 = vmatmul.mubr.f32.vlgmr.msra.gmra.mrb[0].mxu1 %v74_v27 }
  0x24   :  { %1269 = vmatprep.mubr.msk.f32.mxu0 %vm1404_vm0, %v1405_v6  ;;  %1290 = vmatprep.mubr.msk.f32.mxu1 %vm1404_vm0, %v1405_v6 }
  0x27   :  { %1270 = vmatmul.mubr.f32.gmra.mrb[2].mxu0 %v68_v28  ;;  %1291 = vmatmul.mubr.f32.gmra.mrb[2].mxu1 %v75_v29 }
  0x28   :  { %1272 = vmatprep.mubr.msk.f32.mxu0 %vm1404_vm0, %v1405_v6  ;;  %1293 = vmatprep.mubr.msk.f32.mxu1 %vm1404_vm0, %v1405_v6 }
  0x2b   :  { %1273 = vmatmul.mubr.f32.gmra.mrb[4].mxu0 %v69_v30  ;;  %1294 = vmatmul.mubr.f32.gmra.mrb[4].mxu1 %v76_v31 }
  0x2c   :  { %1275 = vmatprep.mubr.msk.f32.mxu0 %vm1404_vm0, %v1405_v6  ;;  %1296 = vmatprep.mubr.msk.f32.mxu1 %vm1404_vm0, %v1405_v6 }
  0x2f   :  { %1276 = vmatmul.mubr.f32.gmra.mrb[6].mxu0 %v70_v32  ;;  %1297 = vmatmul.mubr.f32.gmra.mrb[6].mxu1 %v77_v33 }
  0x30   :  { %1278 = vmatprep.mubr.msk.f32.mxu0 %vm1404_vm0, %v1405_v6  ;;  %1299 = vmatprep.mubr.msk.f32.mxu1 %vm1404_vm0, %v1405_v6 }
  0x33   :  { %1279 = vmatmul.mubr.f32.gmra.mrb[8].mxu0 %v71_v34  ;;  %1300 = vmatmul.mubr.f32.gmra.mrb[8].mxu1 %v78_v35 }
  0x34   :  { %1281 = vmatprep.mubr.msk.f32.mxu0 %vm1404_vm0, %v1405_v6  ;;  %1302 = vmatprep.mubr.msk.f32.mxu1 %vm1404_vm0, %v1405_v6 }
  0x37   :  { %1282 = vmatmul.mubr.f32.gmra.mrb[10].mxu0 %v72_v36  ;;  %1303 = vmatmul.mubr.f32.gmra.mrb[10].mxu1 %v79_v37  ;;  %v1736_v36 = vld [vmem:[#allocation2 + $0x40] sm:$0xff]  ;;  %v1738_v37 = vld [vmem:[#allocation2 + $0x10] sm:$0xff] }
  0x38   :  { %1284 = vmatprep.mubr.msk.f32.mxu0 %vm1404_vm0, %v1405_v6  ;;  %v2860_v6 = vmov 0   ;;  %2949 = vst [vmem:[#allocation14_spill] sm:$0xff] %v1736_v36  ;;  %2950 = vst [vmem:[#allocation15_spill] sm:$0xff] %v1738_v37 }
  0x39   :  { %54 = vst.msk [vmem:[#allocation4] sm:$0xff] %vm27_vm1, %v2860_v6  ;;  %55 = vst.msk [vmem:[#allocation4 + $0x8] sm:$0xff] %vm27_vm1, %v2860_v6 }
  0x3a   :  { %56 = vst.msk [vmem:[#allocation4 + $0x10] sm:$0xff] %vm27_vm1, %v2860_v6  ;;  %57 = vst.msk [vmem:[#allocation4 + $0x18] sm:$0xff] %vm27_vm1, %v2860_v6 }
  0x3b   :  { %1285 = vmatmul.mubr.f32.gmra.mrb[12].mxu0 %v73_v38  ;;  %58 = vst.msk [vmem:[#allocation4 + $0x20] sm:$0xff] %vm27_vm1, %v2860_v6  ;;  %59 = vst.msk [vmem:[#allocation4 + $0x28] sm:$0xff] %vm27_vm1, %v2860_v6 }
  0x3c   :  { %60 = vst.msk [vmem:[#allocation4 + $0x30] sm:$0xff] %vm27_vm1, %v2860_v6  ;;  %61 = vst.msk [vmem:[#allocation4 + $0x38] sm:$0xff] %vm27_vm1, %v2860_v6 }
  0x3d   :  { %62 = vst.msk [vmem:[#allocation4 + $0x40] sm:$0xff] %vm27_vm1, %v2860_v6  ;;  %63 = vst.msk [vmem:[#allocation4 + $0x48] sm:$0xff] %vm27_vm1, %v2860_v6 }
  0x3e   :  { %64 = vst.msk [vmem:[#allocation4 + $0x50] sm:$0xff] %vm27_vm1, %v2860_v6  ;;  %65 = vst.msk [vmem:[#allocation4 + $0x58] sm:$0xff] %vm27_vm1, %v2860_v6 }
  0x3f   :  { %66 = vst.msk [vmem:[#allocation4 + $0x60] sm:$0xff] %vm27_vm1, %v2860_v6 }
  0xf6   :  { %v162_v41 = vpop.f32.mrb[0].mxu0  ;;  %v197_v42 = vpop.f32.mrb[0].mxu1 }
  0xf7   :  { %v1593_v43 = vsub.f32 %v1590_v40, %v162_v41  ;;  %v1596_v44 = vsub.f32 %v1590_v40, %v197_v42  ;;  %v1268_v45 = vpop.f32.mrb[1].mxu0  ;;  %v1289_v46 = vpop.f32.mrb[1].mxu1 }
  0xf9   :  { %260 = vmin.xlane.f32.xlu1 %v1596_v44  ;;  %246 = vmin.xlane.f32.xlu0 %v1593_v43 }
  0xfa   :  { %v167_v47 = vpop.f32.mrb[2].mxu0  ;;  %v202_v48 = vpop.f32.mrb[2].mxu1 }
  0xfb   :  { %v1601_v49 = vsub.f32 %v1590_v40, %v167_v47  ;;  %v1271_v50 = vpop.f32.mrb[3].mxu0  ;;  %v1292_v51 = vpop.f32.mrb[3].mxu1  ;;  %v1605_v52 = vsub.f32 %v1590_v40, %v202_v48 }
  0xfc   :  { %v1764_v50 = vld [vmem:[#allocation2 + $0x50] sm:$0xff]  ;;  %v1766_v51 = vld [vmem:[#allocation2 + $0x48] sm:$0xff] }
  0xfd   :  { %248 = vmin.xlane.f32.xlu0 %v1601_v49  ;;  %2952 = vst [vmem:[#allocation17_spill] sm:$0xff] %v1764_v50  ;;  %2953 = vst [vmem:[#allocation18_spill] sm:$0xff] %v1766_v51 }
  0xfe   :  { %v172_v53 = vpop.f32.mrb[4].mxu0  ;;  %v207_v54 = vpop.f32.mrb[4].mxu1 }
  0xff   :  { %v1608_v55 = vsub.f32 %v1590_v40, %v172_v53  ;;  %v1295_v56 = vpop.f32.mrb[5].mxu1  ;;  %v1274_v57 = vpop.f32.mrb[5].mxu0  ;;  %v1611_v58 = vsub.f32 %v1590_v40, %v207_v54 }
 0x101   :  { %262 = vmin.xlane.f32.xlu0 %v1605_v52  ;;  %250 = vmin.xlane.f32.xlu1 %v1608_v55 }
 0x102   :  { %v212_v59 = vpop.f32.mrb[6].mxu1  ;;  %v177_v60 = vpop.f32.mrb[6].mxu0 }
 0x103   :  { %v1616_v61 = vsub.f32 %v1590_v40, %v212_v59  ;;  %v1277_v62 = vpop.f32.mrb[7].mxu0  ;;  %v1298_v63 = vpop.f32.mrb[7].mxu1  ;;  %v1619_v0 = vsub.f32 %v1590_v40, %v177_v60 }
 0x105   :  { %266 = vmin.xlane.f32.xlu0 %v1616_v61  ;;  %264 = vmin.xlane.f32.xlu1 %v1611_v58 }
 0x106   :  { %v182_v1 = vpop.f32.mrb[8].mxu0  ;;  %v217_v2 = vpop.f32.mrb[8].mxu1 }
 0x107   :  { %v1624_v3 = vsub.f32 %v1590_v40, %v182_v1  ;;  %v1280_v4 = vpop.f32.mrb[9].mxu0  ;;  %v1301_v5 = vpop.f32.mrb[9].mxu1  ;;  %v1659_v12 = vsub.f32 %v1590_v40, %v217_v2  ;;  %v1801_v2 = vld [vmem:[#allocation2 + $0x18] sm:$0xff] }
 0x108   :  { %2956 = vst [vmem:[#allocation21_spill] sm:$0xff] %v1801_v2  ;;  %v1803_v4 = vld [vmem:[#allocation2 + $0x20] sm:$0xff] }
 0x109   :  { %252 = vmin.xlane.f32.xlu1 %v1619_v0  ;;  %254 = vmin.xlane.f32.xlu0 %v1624_v3  ;;  %2940 = vst [vmem:[#allocation5_spill] sm:$0xff] %v1659_v12  ;;  %2957 = vst [vmem:[#allocation22_spill] sm:$0xff] %v1803_v4 }
 0x10a   :  { %v187_v7 = vpop.f32.mrb[10].mxu0  ;;  %v222_v8 = vpop.f32.mrb[10].mxu1 }
 0x10b   :  { %v1655_v9 = vsub.f32 %v1590_v40, %v187_v7  ;;  %v1283_v10 = vpop.f32.mrb[11].mxu0  ;;  %v1304_v11 = vpop.f32.mrb[11].mxu1  ;;  %v1667_v16 = vsub.f32 %v1590_v40, %v222_v8 }
 0x10d   :  { %256 = vmin.xlane.f32.xlu1 %v1655_v9 }
 0x10e   :  { %v192_v13 = vpop.f32.mrb[12].mxu0 }
 0x10f   :  { %v1662_v14 = vsub.f32 %v1590_v40, %v192_v13  ;;  %v1286_v15 = vpop.f32.mrb[13].mxu0 }
 0x111   :  { %268 = vmin.xlane.f32.xlu1 %v1659_v12  ;;  %258 = vmin.xlane.f32.xlu0 %v1662_v14 }
 0x115   :  { %270 = vmin.xlane.f32.xlu0 %v1667_v16 }
 0x186   :  { %v1674_v19 = vpop.xlane.xlu1 %260  ;;  %v1676_v20 = vpop.xlane.xlu0 %246 }
 0x187   :  { %2943 = vst [vmem:[#allocation8_spill] sm:$0xff] %v1676_v20  ;;  %v1685_v22 = vmin.f32 %v1670_v17, %v1674_v19  ;;  %v1689_v23 = vmin.f32 %v1672_v18, %v1676_v20  ;;  %vm272_vm2 = vcmp.eq.f32.partialorder %v1593_v43, %v1676_v20  ;;  %vm2923_vm3 = vcmp.eq.f32.partialorder %v1596_v44, %v1674_v19 }
 0x188   :  { %v1705_v25 = vsel %vm272_vm2, %v1681_v21, 1073741824  ;;  %v1711_v26 = vsel %vm2923_vm3, %v1681_v21, 1073741824  ;;  %v1721_v30 = vsel %vm2923_vm3, 1, %v2860_v6  ;;  %v524_v31 = vsel %vm272_vm2, 1, %v2860_v6 }
 0x189   :  { %844 = vst.msk [vmem:[#allocation2 + $0x38] sm:$0xff] %vm27_vm1, %v1685_v22  ;;  %837 = vst.msk [vmem:[#allocation2] sm:$0xff] %vm27_vm1, %v1689_v23  ;;  %v304_v28 = vshra.s32 %v1705_v25, 16  ;;  %v402_v29 = vshra.s32 %v1711_v26, 16  ;;  %v622_v33 = vshrl.u32 %v1721_v30, 16  ;;  %v538_v38 = vshrl.u32 %v524_v31, 16 }
 0x18a   :  { %2945 = vst [vmem:[#allocation10_spill] sm:$0xff] %v1705_v25  ;;  %2946 = vst [vmem:[#allocation11_spill] sm:$0xff] %v1711_v26  ;;  %v1713_v27 = vpop.xlane.xlu0 %248  ;;  %v537_v46 = vand.u32 65535, %v524_v31  ;;  %v1834_v31 = vld [vmem:[#allocation2 + $0x28] sm:$0xff] }
 0x18b   :  { %v1729_v32 = vmin.f32 %v1691_v24, %v1713_v27  ;;  %v1732_v34 = vcvt.s32.f32 %v304_v28  ;;  %v1734_v35 = vcvt.s32.f32 %v402_v29  ;;  %vm273_vm4 = vcmp.eq.f32.partialorder %v1601_v49, %v1713_v27  ;;  %2959 = vst [vmem:[#allocation24_spill] sm:$0xff] %v1834_v31 }
 0x18c   :  { %v1748_v39 = vsel %vm273_vm4, %v1681_v21, 1073741824  ;;  %v624_v47 = vcvt.s32.f32 %v622_v33  ;;  %v540_v48 = vcvt.s32.f32 %v538_v38  ;;  %v539_v63 = vcvt.s32.f32 %v537_v46 }
 0x18d   :  { %2947 = vst [vmem:[#allocation12_spill] sm:$0xff] %v1732_v34  ;;  %2948 = vst [vmem:[#allocation13_spill] sm:$0xff] %v1734_v35  ;;  %307 = vmin.xlane.f32.xlu1 %v1732_v34  ;;  %405 = vmin.xlane.f32.xlu0 %v1734_v35  ;;  %v318_v53 = vshra.s32 %v1748_v39, 16  ;;  %v525_v8 = vsel %vm273_vm4, 1, %v2860_v6 }
 0x18e   :  { %838 = vst.msk [vmem:[#allocation2 + $0x8] sm:$0xff] %vm27_vm1, %v1729_v32  ;;  %2951 = vst [vmem:[#allocation16_spill] sm:$0xff] %v1748_v39  ;;  %v1752_v40 = vpop.xlane.xlu0 %262  ;;  %v1754_v41 = vpop.xlane.xlu1 %250  ;;  %v550_v33 = vshrl.u32 %v525_v8, 16  ;;  %v549_v38 = vand.u32 65535, %v525_v8  ;;  %v1861_v8 = vld [vmem:[#allocation2 + $0x30] sm:$0xff]  ;;  %v892_v39 = vmul.f32 2.0, %v1689_v23 }
 0x18f   :  { %v1758_v42 = vmin.f32 %v1736_v36, %v1752_v40  ;;  %v1762_v45 = vmin.f32 %v1738_v37, %v1754_v41  ;;  %vm280_vm5 = vcmp.eq.f32.partialorder %v1605_v52, %v1752_v40  ;;  %v1799_v1 = vcvt.s32.f32 %v318_v53  ;;  %2963 = vst [vmem:[#allocation28_spill] sm:$0xff] %v1861_v8  ;;  %v1900_v37 = vld [vmem:[#allocation2 + $0x60] sm:$0xff] }
 0x190   :  { %v1779_v54 = vsel %vm280_vm5, %v1681_v21, 1073741824  ;;  %v1785_v56 = vsel %vm280_vm5, 1, %v2860_v6  ;;  %vm274_vm6 = vcmp.eq.f32.partialorder %v1608_v55, %v1754_v41  ;;  %2968 = vst [vmem:[#allocation32_spill] sm:$0xff] %v1900_v37 }
 0x191   :  { %845 = vst.msk [vmem:[#allocation2 + $0x40] sm:$0xff] %vm27_vm1, %v1758_v42  ;;  %839 = vst.msk [vmem:[#allocation2 + $0x10] sm:$0xff] %vm27_vm1, %v1762_v45  ;;  %627 = vadd.xlane.f32.xlu1 %v624_v47  ;;  %543 = vadd.xlane.f32.xlu0 %v540_v48  ;;  %v416_v5 = vshra.s32 %v1779_v54, 16  ;;  %v634_v7 = vshrl.u32 %v1785_v56, 16  ;;  %v1844_v46 = vsel %vm274_vm6, %v1681_v21, 1073741824 }
 0x192   :  { %2954 = vst [vmem:[#allocation19_spill] sm:$0xff] %v1779_v54  ;;  %v1787_v57 = vpop.xlane.xlu0 %266  ;;  %v1789_v59 = vpop.xlane.xlu1 %264  ;;  %2955 = vst [vmem:[#allocation20_spill] sm:$0xff] %v1799_v1  ;;  %v332_v6 = vshra.s32 %v1844_v46, 16 }
 0x193   :  { %v1793_v60 = vmin.f32 %v1764_v50, %v1787_v57  ;;  %v1797_v62 = vmin.f32 %v1766_v51, %v1789_v59  ;;  %vm2921_vm7 = vcmp.eq.f32.partialorder %v1611_v58, %v1789_v59  ;;  %v1832_v28 = vcvt.s32.f32 %v416_v5  ;;  %2960 = vst [vmem:[#allocation25_spill] sm:$0xff] %v1844_v46 }
 0x194   :  { %v636_v29 = vcvt.s32.f32 %v634_v7  ;;  %v1850_v47 = vsel %vm2921_vm7, %v1681_v21, 1073741824  ;;  %v551_v5 = vcvt.s32.f32 %v549_v38  ;;  %v1859_v7 = vld [vmem:[#allocation2 + $0x58] sm:$0xff]  ;;  %vm2922_vm8 = vcmp.eq.f32.partialorder %v1616_v61, %v1787_v57 }
 0x195   :  { %847 = vst.msk [vmem:[#allocation2 + $0x50] sm:$0xff] %vm27_vm1, %v1793_v60  ;;  %846 = vst.msk [vmem:[#allocation2 + $0x48] sm:$0xff] %vm27_vm1, %v1797_v62  ;;  %541 = vadd.xlane.f32.xlu1 %v539_v63  ;;  %321 = vmin.xlane.f32.xlu0 %v1799_v1  ;;  %v552_v63 = vcvt.s32.f32 %v550_v33  ;;  %v430_v50 = vshra.s32 %v1850_v47, 16 }
 0x196   :  { %v1816_v10 = vpop.xlane.xlu1 %252  ;;  %v1818_v11 = vpop.xlane.xlu0 %254  ;;  %2958 = vst [vmem:[#allocation23_spill] sm:$0xff] %v1832_v28  ;;  %2961 = vst [vmem:[#allocation26_spill] sm:$0xff] %v1850_v47 }
 0x197   :  { %v1826_v13 = vmin.f32 %v1801_v2, %v1816_v10  ;;  %v1830_v15 = vmin.f32 %v1803_v4, %v1818_v11  ;;  %2962 = vst [vmem:[#allocation27_spill] sm:$0xff] %v1859_v7  ;;  %vm275_vm9 = vcmp.eq.f32.partialorder %v1619_v0, %v1816_v10  ;;  %v1898_v2 = vcvt.s32.f32 %v430_v50 }
 0x198   :  { %v1917_v50 = vsel %vm275_vm9, %v1681_v21, 1073741824  ;;  %vm276_vm10 = vcmp.eq.f32.partialorder %v1624_v3, %v1818_v11 }
 0x199   :  { %840 = vst.msk [vmem:[#allocation2 + $0x18] sm:$0xff] %vm27_vm1, %v1826_v13  ;;  %841 = vst.msk [vmem:[#allocation2 + $0x20] sm:$0xff] %vm27_vm1, %v1830_v15  ;;  %419 = vmin.xlane.f32.xlu1 %v1832_v28  ;;  %639 = vadd.xlane.f32.xlu0 %v636_v29  ;;  %v2964_v29 = vmov 0   ;;  %v346_v1 = vshra.s32 %v1917_v50, 16 }
 0x19a   :  { %v1853_v48 = vpop.xlane.xlu1 %256  ;;  %v1871_v51 = vsel %vm2921_vm7, 1, %v2964_v29  ;;  %v1877_v33 = vsel %vm274_vm6, 1, %v2964_v29  ;;  %2967 = vst [vmem:[#allocation31_spill] sm:$0xff] %v1898_v2  ;;  %2970 = vst [vmem:[#allocation34_spill] sm:$0xff] %v1917_v50 }
 0x19b   :  { %v1857_v53 = vmin.f32 %v1834_v31, %v1853_v48  ;;  %v646_v24 = vshrl.u32 %v1871_v51, 16  ;;  %v562_v17 = vshrl.u32 %v1877_v33, 16  ;;  %vm277_vm12 = vcmp.eq.f32.partialorder %v1655_v9, %v1853_v48 }
 0x19d   :  { %842 = vst.msk [vmem:[#allocation2 + $0x28] sm:$0xff] %vm27_vm1, %v1857_v53  ;;  %555 = vadd.xlane.f32.xlu1 %v552_v63  ;;  %553 = vadd.xlane.f32.xlu0 %v551_v5  ;;  %v885_v63 = vld [vmem:[%s2856_s4 + $0x30] sm:$0xff]  ;;  %v1896_v5 = vcvt.s32.f32 %v332_v6  ;;  %v1911_v6 = vsel %vm2922_vm8, %v1681_v21, 1073741824  ;;  %v648_v47 = vcvt.s32.f32 %v646_v24  ;;  %v564_v46 = vcvt.s32.f32 %v562_v17 }
 0x19e   :  { %v1879_v38 = vpop.xlane.xlu1 %268  ;;  %v1881_v36 = vpop.xlane.xlu0 %258  ;;  %2969 = vst [vmem:[#allocation33_spill] sm:$0xff] %v1911_v6  ;;  %v444_v28 = vshra.s32 %v1911_v6, 16  ;;  %v1941_v24 = vsel %vm2922_vm8, 1, %v2964_v29 }
 0x19f   :  { %2965 = vst [vmem:[#allocation29_spill] sm:$0xff] %v1879_v38  ;;  %v1889_v31 = vmin.f32 %v1859_v7, %v1879_v38  ;;  %v764_v4 = vmin.f32 %v1861_v8, %v1881_v36  ;;  %2966 = vst [vmem:[#allocation30_spill] sm:$0xff] %v1896_v5  ;;  %vm2920_vm11 = vcmp.eq.f32.partialorder %v1659_v12, %v1879_v38 }
 0x1a0   :  { %v1947_v17 = vcvt.s32.f32 %v444_v28  ;;  %v1975_v6 = vsel %vm2920_vm11, 1, %v2964_v29  ;;  %vm278_vm0 = vcmp.eq.f32.partialorder %v1662_v14, %v1881_v36 }
 0x1a1   :  { %848 = vst.msk [vmem:[#allocation2 + $0x58] sm:$0xff] %vm27_vm1, %v1889_v31  ;;  %843 = vst.msk [vmem:[#allocation2 + $0x30] sm:$0xff] %vm27_vm1, %v764_v4  ;;  %v898_v8 = vmul.f32 2.0, %v764_v4  ;;  %335 = vmin.xlane.f32.xlu1 %v1896_v5  ;;  %433 = vmin.xlane.f32.xlu0 %v1898_v2  ;;  %v1935_v2 = vsel %vm275_vm9, 1, %v2964_v29 }
 0x1a2   :  { %v1921_v7 = vpop.xlane.xlu0 %270  ;;  %2971 = vst [vmem:[#allocation35_spill] sm:$0xff] %v1947_v17 }
 0x1a3   :  { %v911_v18 = vadd.f32 %v898_v8, %v885_v63  ;;  %v1925_v4 = vmin.f32 %v1900_v37, %v1921_v7  ;;  %v574_v8 = vshrl.u32 %v1935_v2, 16  ;;  %v658_v63 = vshrl.u32 %v1941_v24, 16 }
 0x1a4   :  { %vm2919_vm13 = vcmp.eq.f32.partialorder %v1667_v16, %v1921_v7 }
 0x1a5   :  { %v924_v54 = vmax.f32 %v911_v18, 0.0  ;;  %849 = vst.msk [vmem:[#allocation2 + $0x60] sm:$0xff] %vm27_vm1, %v1925_v4  ;;  %651 = vadd.xlane.f32.xlu1 %v648_v47  ;;  %567 = vadd.xlane.f32.xlu0 %v564_v46  ;;  %v1949_v18 = vcvt.s32.f32 %v346_v1  ;;  %v1957_v46 = vsel %vm276_vm10, %v1681_v21, 1073741824  ;;  %v1963_v47 = vsel %vm2920_vm11, %v1681_v21, 1073741824 }
 0x1a6   :  { %2973 = vst [vmem:[#allocation37_spill] sm:$0xff] %v1957_v46  ;;  %2974 = vst [vmem:[#allocation38_spill] sm:$0xff] %v1963_v47  ;;  %v576_v1 = vcvt.s32.f32 %v574_v8  ;;  %v660_v28 = vcvt.s32.f32 %v658_v63  ;;  %v360_v37 = vshra.s32 %v1957_v46, 16  ;;  %v458_v50 = vshra.s32 %v1963_v47, 16 }
 0x1a7   :  { %1350 = vrsqrt.f32 %v924_v54  ;;  %2972 = vst [vmem:[#allocation36_spill] sm:$0xff] %v1949_v18  ;;  %v1989_v8 = vsel %vm277_vm12, %v1681_v21, 1073741824  ;;  %v670_v46 = vshrl.u32 %v1975_v6, 16  ;;  %vm975_vm14 = vcmp.eq.f32.partialorder %v924_v54, inf }
 0x1a8   :  { %2975 = vst [vmem:[#allocation39_spill] sm:$0xff] %v1989_v8  ;;  %v1991_v63 = vcvt.s32.f32 %v360_v37  ;;  %v1993_v47 = vcvt.s32.f32 %v458_v50  ;;  %vm977_vm15 = vcmp.eq.f32.partialorder %v924_v54, 0.0  ;;  %v374_v37 = vshra.s32 %v1989_v8, 16  ;;  %v2010_v50 = vld [vmem:[%s2856_s4] sm:$0xff] }
 0x1a9   :  { %447 = vmin.xlane.f32.xlu1 %v1947_v17  ;;  %349 = vmin.xlane.f32.xlu0 %v1949_v18  ;;  %v1981_v18 = vsel %vm276_vm10, 1, %v2964_v29  ;;  %2978 = vst [vmem:[#allocation42_spill] sm:$0xff] %v2010_v50  ;;  %v672_v26 = vcvt.s32.f32 %v670_v46  ;;  %v2017_v23 = vsel %vm2919_vm13, 1, %v2964_v29  ;;  %v561_v8 = vand.u32 65535, %v1877_v33 }
 0x1aa   :  { %2976 = vst [vmem:[#allocation40_spill] sm:$0xff] %v1993_v47  ;;  %v586_v17 = vshrl.u32 %v1981_v18, 16  ;;  %v633_v33 = vand.u32 65535, %v1785_v56 }
 0x1ac   :  { %v588_v25 = vcvt.s32.f32 %v586_v17  ;;  %v2034_v17 = vcvt.s32.f32 %v374_v37  ;;  %v897_v37 = vmul.f32 2.0, %v1857_v53 }
 0x1ad   :  { %579 = vadd.xlane.f32.xlu1 %v576_v1  ;;  %663 = vadd.xlane.f32.xlu0 %v660_v28  ;;  %v978_v1 = vand.u32 2147483648, %v924_v54  ;;  %v2001_v28 = vsel %vm2919_vm13, %v1681_v21, 1073741824 }
 0x1ae   :  { %2977 = vst [vmem:[#allocation41_spill] sm:$0xff] %v2001_v28  ;;  %v472_v38 = vshra.s32 %v2001_v28, 16  ;;  %2979 = vst [vmem:[#allocation43_spill] sm:$0xff] %v2034_v17 }
 0x1b0   :  { %v2036_v46 = vcvt.s32.f32 %v472_v38  ;;  %v896_v38 = vmul.f32 2.0, %v1830_v15 }
 0x1b1   :  { %v1351_v5 = vpop.eup %1350  ;;  %363 = vmin.xlane.f32.xlu1 %v1991_v63  ;;  %461 = vmin.xlane.f32.xlu0 %v1993_v47 }
 0x1b2   :  { %v974_v35 = vmul.f32 %v1351_v5, %v924_v54  ;;  %v2023_v5 = vsel %vm277_vm12, 1, %v2964_v29  ;;  %2980 = vst [vmem:[#allocation44_spill] sm:$0xff] %v2036_v46 }
 0x1b3   :  { %v598_v28 = vshrl.u32 %v2023_v5, 16 }
 0x1b4   :  { %v976_v34 = vsel %vm975_vm14, %v924_v54, %v974_v35  ;;  %v893_v35 = vmul.f32 2.0, %v1729_v32  ;;  %v894_v54 = vmul.f32 2.0, %v1762_v45  ;;  %v895_v32 = vmul.f32 2.0, %v1826_v13  ;;  %v2069_v13 = vld [vmem:[%s2856_s4 + $0x18] sm:$0xff] }
 0x1b5   :  { %v979_v12 = vsel %vm977_vm15, %v978_v1, %v976_v34  ;;  %675 = vadd.xlane.f32.xlu1 %v672_v26  ;;  %591 = vadd.xlane.f32.xlu0 %v588_v25  ;;  %v905_v34 = vadd.f32 %v892_v39, %v2010_v50  ;;  %v682_v1 = vshrl.u32 %v2017_v23, 16  ;;  %v2048_v25 = vld [vmem:[%s2856_s4 + $0x10] sm:$0xff]  ;;  %v899_v26 = vmul.f32 2.0, %v1685_v22 }
 0x1b6   :  { %1028 = vst.msk [vmem:[%s2857_s5 + $0x30] sm:$0xff] %vm27_vm1, %v979_v12  ;;  %v2043_v12 = vld [vmem:[%s2856_s4 + $0x8] sm:$0xff]  ;;  %2982 = vst [vmem:[#allocation46_spill] sm:$0xff] %v2048_v25  ;;  %v2056_v39 = vsel %vm278_vm0, %v1681_v21, 1073741824  ;;  %v621_v45 = vand.u32 65535, %v1721_v30  ;;  %v573_v22 = vand.u32 65535, %v1935_v2  ;;  %v907_v53 = vadd.f32 %v894_v54, %v2048_v25 }
 0x1b7   :  { %2981 = vst [vmem:[#allocation45_spill] sm:$0xff] %v2043_v12  ;;  %2983 = vst [vmem:[#allocation47_spill] sm:$0xff] %v2056_v39  ;;  %v2064_v50 = vmax.f32 %v905_v34, 0.0  ;;  %v900_v21 = vmul.f32 2.0, %v1758_v42  ;;  %v2073_v30 = vmul.f32 2.0, %v1793_v60  ;;  %v906_v15 = vadd.f32 %v893_v35, %v2043_v12  ;;  %v2080_v2 = vld [vmem:[%s2856_s4 + $0x20] sm:$0xff] }
 0x1b8   :  { %v2085_v34 = vld [vmem:[%s2856_s4 + $0x28] sm:$0xff]  ;;  %v600_v47 = vcvt.s32.f32 %v598_v28  ;;  %v388_v42 = vshra.s32 %v2056_v39, 16  ;;  %v901_v60 = vmul.f32 2.0, %v1797_v62  ;;  %v2092_v54 = vmax.f32 %v907_v53, 0.0 }
 0x1b9   :  { %377 = vmin.xlane.f32.xlu0 %v2034_v17  ;;  %475 = vmin.xlane.f32.xlu1 %v2036_v46  ;;  %v684_v46 = vcvt.s32.f32 %v682_v1  ;;  %1352 = vrsqrt.f32 %v2064_v50  ;;  %v2090_v35 = vmax.f32 %v906_v15, 0.0  ;;  %v908_v25 = vadd.f32 %v895_v32, %v2069_v13  ;;  %v2105_v32 = vld [vmem:[%s2856_s4 + $0x38] sm:$0xff] }
 0x1ba   :  { %v903_v12 = vmul.f32 2.0, %v1889_v31  ;;  %v575_v17 = vcvt.s32.f32 %v573_v22  ;;  %v909_v1 = vadd.f32 %v896_v38, %v2080_v2  ;;  %v910_v28 = vadd.f32 %v897_v37, %v2085_v34  ;;  %v2110_v31 = vld [vmem:[%s2856_s4 + $0x40] sm:$0xff] }
 0x1bb   :  { %v597_v39 = vand.u32 65535, %v2023_v5  ;;  %v585_v62 = vand.u32 65535, %v1981_v18  ;;  %1354 = vrsqrt.f32 %v2090_v35  ;;  %v645_v5 = vand.u32 65535, %v1871_v51 }
 0x1bc   :  { %1356 = vrsqrt.f32 %v2092_v54  ;;  %v669_v18 = vand.u32 65535, %v1975_v6  ;;  %v2120_v38 = vmax.f32 %v909_v1, 0.0  ;;  %v2122_v37 = vmax.f32 %v910_v28, 0.0 }
 0x1bd   :  { %687 = vadd.xlane.f32.xlu0 %v684_v46  ;;  %603 = vadd.xlane.f32.xlu1 %v600_v47  ;;  %v2112_v47 = vcvt.s32.f32 %v388_v42  ;;  %v2118_v46 = vmax.f32 %v908_v25, 0.0  ;;  %v2125_v22 = vmul.f32 2.0, %v1925_v4  ;;  %v623_v15 = vcvt.s32.f32 %v621_v45  ;;  %v2134_v25 = vld [vmem:[%s2856_s4 + $0x48] sm:$0xff] }
 0x1be   :  { %v912_v51 = vadd.f32 %v899_v26, %v2105_v32  ;;  %v913_v56 = vadd.f32 %v900_v21, %v2110_v31  ;;  %v599_v53 = vcvt.s32.f32 %v597_v39  ;;  %v563_v42 = vcvt.s32.f32 %v561_v8  ;;  %v2141_v26 = vld [vmem:[%s2856_s4 + $0x50] sm:$0xff]  ;;  %v2146_v8 = vld [vmem:[%s2856_s4 + $0x58] sm:$0xff] }
 0x1bf   :  { %v587_v6 = vcvt.s32.f32 %v585_v62  ;;  %1358 = vrsqrt.f32 %v2118_v46  ;;  %v647_v4 = vcvt.s32.f32 %v645_v5  ;;  %v635_v1 = vcvt.s32.f32 %v633_v33  ;;  %2984 = vst [vmem:[#allocation48_spill] sm:$0xff] %v2146_v8 }
 0x1c0   :  { %1360 = vrsqrt.f32 %v2120_v38  ;;  %v2148_v39 = vcvt.s32.f32 %v669_v18  ;;  %vm933_vm14 = vcmp.eq.f32.partialorder %v2064_v50, inf  ;;  %vm935_vm15 = vcmp.eq.f32.partialorder %v2064_v50, 0.0 }
 0x1c1   :  { %577 = vadd.xlane.f32.xlu0 %v575_v17  ;;  %391 = vmin.xlane.f32.xlu1 %v2112_v47  ;;  %1362 = vrsqrt.f32 %v2122_v37  ;;  %v2154_v28 = vmax.f32 %v912_v51, 0.0  ;;  %v2156_v62 = vmax.f32 %v913_v56, 0.0  ;;  %v914_v5 = vadd.f32 %v901_v60, %v2134_v25 }
 0x1c2   :  { %v936_v18 = vand.u32 2147483648, %v2064_v50  ;;  %v915_v45 = vadd.f32 %v2073_v30, %v2141_v26  ;;  %v916_v17 = vadd.f32 %v903_v12, %v2146_v8  ;;  %vm940_vm13 = vcmp.eq.f32.partialorder %v2090_v35, inf }
 0x1c3   :  { %v1353_v21 = vpop.eup %1352  ;;  %vm942_vm11 = vcmp.eq.f32.partialorder %v2090_v35, 0.0  ;;  %v943_v51 = vand.u32 2147483648, %v2090_v35  ;;  %1364 = vrsqrt.f32 %v2154_v28  ;;  %vm947_vm7 = vcmp.eq.f32.partialorder %v2092_v54, inf }
 0x1c4   :  { %v932_v33 = vmul.f32 %v1353_v21, %v2064_v50  ;;  %vm949_vm8 = vcmp.eq.f32.partialorder %v2092_v54, 0.0  ;;  %1366 = vrsqrt.f32 %v2156_v62  ;;  %v2178_v21 = vmax.f32 %v914_v5, 0.0 }
 0x1c5   :  { %601 = vadd.xlane.f32.xlu0 %v599_v53  ;;  %565 = vadd.xlane.f32.xlu1 %v563_v42  ;;  %v1355_v56 = vpop.eup %1354  ;;  %v950_v42 = vand.u32 2147483648, %v2092_v54  ;;  %v957_v5 = vand.u32 2147483648, %v2118_v46  ;;  %vm961_vm3 = vcmp.eq.f32.partialorder %v2120_v38, inf }
 0x1c6   :  { %v934_v60 = vsel %vm933_vm14, %v2064_v50, %v932_v33  ;;  %v1357_v12 = vpop.eup %1356  ;;  %v939_v53 = vmul.f32 %v1355_v56, %v2090_v35  ;;  %vm954_vm14 = vcmp.eq.f32.partialorder %v2118_v46, inf  ;;  %1368 = vrsqrt.f32 %v2178_v21 }
 0x1c7   :  { %v937_v30 = vsel %vm935_vm15, %v936_v18, %v934_v60  ;;  %v946_v33 = vmul.f32 %v1357_v12, %v2092_v54  ;;  %vm956_vm15 = vcmp.eq.f32.partialorder %v2118_v46, 0.0  ;;  %v964_v60 = vand.u32 2147483648, %v2120_v38  ;;  %v2215_v12 = vld [vmem:[%s2856_s4 + $0x60] sm:$0xff] }
 0x1c8   :  { %1022 = vst.msk [vmem:[%s2857_s5] sm:$0xff] %vm27_vm1, %v937_v30  ;;  %v941_v50 = vsel %vm940_vm13, %v2090_v35, %v939_v53  ;;  %2985 = vst [vmem:[#allocation49_spill] sm:$0xff] %v2215_v12  ;;  %v2986_v30 = vand.u32 65535, %v1941_v24  ;;  %vm989_vm13 = vcmp.eq.f32.partialorder %v2156_v62, inf }
 0x1c9   :  { %625 = vadd.xlane.f32.xlu0 %v623_v15  ;;  %589 = vadd.xlane.f32.xlu1 %v587_v6  ;;  %v2186_v15 = vmax.f32 %v915_v45, 0.0  ;;  %v2188_v6 = vmax.f32 %v916_v17, 0.0  ;;  %v1359_v18 = vpop.eup %1358  ;;  %v944_v56 = vsel %vm942_vm11, %v943_v51, %v941_v50  ;;  %v948_v45 = vsel %vm947_vm7, %v2092_v54, %v946_v33 }
 0x1ca   :  { %v1361_v17 = vpop.eup %1360  ;;  %1023 = vst.msk [vmem:[%s2857_s5 + $0x8] sm:$0xff] %vm27_vm1, %v944_v56  ;;  %v951_v35 = vsel %vm949_vm8, %v950_v42, %v948_v45  ;;  %v953_v51 = vmul.f32 %v1359_v18, %v2118_v46  ;;  %vm963_vm11 = vcmp.eq.f32.partialorder %v2120_v38, 0.0  ;;  %vm968_vm7 = vcmp.eq.f32.partialorder %v2122_v37, inf }
 0x1cb   :  { %1370 = vrsqrt.f32 %v2186_v15  ;;  %1024 = vst.msk [vmem:[%s2857_s5 + $0x10] sm:$0xff] %vm27_vm1, %v951_v35  ;;  %v960_v54 = vmul.f32 %v1361_v17, %v2120_v38  ;;  %v659_v53 = vcvt.s32.f32 %v2986_v30  ;;  %vm970_vm8 = vcmp.eq.f32.partialorder %v2122_v37, 0.0 }
 0x1cc   :  { %1372 = vrsqrt.f32 %v2188_v6  ;;  %v955_v42 = vsel %vm954_vm14, %v2118_v46, %v953_v51  ;;  %v485_v50 = vsel %vm272_vm2, 1e+30, %v1593_v43  ;;  %v917_v56 = vadd.f32 %v2125_v22, %v2215_v12  ;;  %v3039_v12 = vld [vmem:[#allocation14_spill] sm:$0xff] }
 0x1cd   :  { %649 = vadd.xlane.f32.xlu0 %v647_v4  ;;  %637 = vadd.xlane.f32.xlu1 %v635_v1  ;;  %v1363_v4 = vpop.eup %1362  ;;  %v971_v1 = vand.u32 2147483648, %v2122_v37  ;;  %v958_v18 = vsel %vm956_vm15, %v957_v5, %v955_v42  ;;  %v962_v24 = vsel %vm961_vm3, %v2120_v38, %v960_v54  ;;  %v2987_v17 = vand.u32 65535, %v2017_v23 }
 0x1ce   :  { %v967_v33 = vmul.f32 %v1363_v4, %v2122_v37  ;;  %v1365_v45 = vpop.eup %1364  ;;  %1025 = vst.msk [vmem:[%s2857_s5 + $0x18] sm:$0xff] %vm27_vm1, %v958_v18  ;;  %v965_v43 = vsel %vm963_vm11, %v964_v60, %v962_v24  ;;  %vm982_vm2 = vcmp.eq.f32.partialorder %v2154_v28, inf  ;;  %vm984_vm3 = vcmp.eq.f32.partialorder %v2154_v28, 0.0 }
 0x1cf   :  { %v683_v35 = vcvt.s32.f32 %v2987_v17  ;;  %v1367_v22 = vpop.eup %1366  ;;  %1026 = vst.msk [vmem:[%s2857_s5 + $0x20] sm:$0xff] %vm27_vm1, %v965_v43  ;;  %v930_v5 = vmax.f32 %v917_v56, 0.0  ;;  %v985_v38 = vand.u32 2147483648, %v2154_v28  ;;  %vm991_vm14 = vcmp.eq.f32.partialorder %v2156_v62, 0.0 }
 0x1d0   :  { %v969_v46 = vsel %vm968_vm7, %v2122_v37, %v967_v33  ;;  %v988_v37 = vmul.f32 %v1367_v22, %v2156_v62  ;;  %v992_v60 = vand.u32 2147483648, %v2156_v62  ;;  %vm996_vm15 = vcmp.eq.f32.partialorder %v2178_v21, inf  ;;  %v1369_v4 = vpop.eup %1368 }
 0x1d1   :  { %673 = vadd.xlane.f32.xlu0 %v2148_v39  ;;  %661 = vadd.xlane.f32.xlu1 %v659_v53  ;;  %v972_v23 = vsel %vm970_vm8, %v971_v1, %v969_v46  ;;  %v981_v39 = vmul.f32 %v1365_v45, %v2154_v28  ;;  %1374 = vrsqrt.f32 %v930_v5  ;;  %vm998_vm11 = vcmp.eq.f32.partialorder %v2178_v21, 0.0 }
 0x1d2   :  { %1027 = vst.msk [vmem:[%s2857_s5 + $0x28] sm:$0xff] %vm27_vm1, %v972_v23  ;;  %v990_v1 = vsel %vm989_vm13, %v2156_v62, %v988_v37  ;;  %v999_v30 = vand.u32 2147483648, %v2178_v21  ;;  %v995_v42 = vmul.f32 %v1369_v4, %v2178_v21  ;;  %vm1003_vm7 = vcmp.eq.f32.partialorder %v2186_v15, inf }
 0x1d3   :  { %v983_v51 = vsel %vm982_vm2, %v2154_v28, %v981_v39  ;;  %v993_v28 = vsel %vm991_vm14, %v992_v60, %v990_v1  ;;  %v1006_v33 = vand.u32 2147483648, %v2186_v15  ;;  %v487_v62 = vsel %vm274_vm6, 1e+30, %v1608_v55 }
 0x1d4   :  { %v986_v54 = vsel %vm984_vm3, %v985_v38, %v983_v51  ;;  %1030 = vst.msk [vmem:[%s2857_s5 + $0x40] sm:$0xff] %vm27_vm1, %v993_v28  ;;  %vm1005_vm8 = vcmp.eq.f32.partialorder %v2186_v15, 0.0  ;;  %v486_v24 = vsel %vm273_vm4, 1e+30, %v1601_v49  ;;  %v997_v56 = vsel %vm996_vm15, %v2178_v21, %v995_v42 }
 0x1d5   :  { %498 = vmin.xlane.f32.xlu0 %v485_v50  ;;  %685 = vadd.xlane.f32.xlu1 %v683_v35  ;;  %v1371_v53 = vpop.eup %1370  ;;  %1029 = vst.msk [vmem:[%s2857_s5 + $0x38] sm:$0xff] %vm27_vm1, %v986_v54  ;;  %vm1010_vm6 = vcmp.eq.f32.partialorder %v2188_v6, inf  ;;  %v1013_v55 = vand.u32 2147483648, %v2188_v6  ;;  %v1000_v45 = vsel %vm998_vm11, %v999_v30, %v997_v56  ;;  %vm1012_vm2 = vcmp.eq.f32.partialorder %v2188_v6, 0.0  ;;  %v2991_v54 = vld [vmem:[#allocation5_spill] sm:$0xff] }
 0x1d6   :  { %v1002_v50 = vmul.f32 %v1371_v53, %v2186_v15  ;;  %v1373_v18 = vpop.eup %1372  ;;  %1031 = vst.msk [vmem:[%s2857_s5 + $0x48] sm:$0xff] %vm27_vm1, %v1000_v45  ;;  %v488_v43 = vsel %vm275_vm9, 1e+30, %v1619_v0  ;;  %vm1017_vm4 = vcmp.eq.f32.partialorder %v930_v5, inf  ;;  %vm1019_vm3 = vcmp.eq.f32.partialorder %v930_v5, 0.0  ;;  %v2996_v53 = vld [vmem:[#allocation11_spill] sm:$0xff] }
 0x1d7   :  { %v1009_v35 = vmul.f32 %v1373_v18, %v2188_v6  ;;  %v490_v0 = vsel %vm277_vm12, 1e+30, %v1655_v9  ;;  %v493_v37 = vsel %vm280_vm5, 1e+30, %v1605_v52  ;;  %vm2988_vm9 = vcmp.eq.f32.partialorder %v1596_v44, %v1674_v19  ;;  %v2999_v18 = vld [vmem:[#allocation12_spill] sm:$0xff] }
 0x1d8   :  { %v1004_v17 = vsel %vm1003_vm7, %v2186_v15, %v1002_v50  ;;  %v489_v15 = vsel %vm276_vm10, 1e+30, %v1624_v3  ;;  %v491_v3 = vsel %vm278_vm0, 1e+30, %v1662_v14  ;;  %v492_v51 = vsel %vm2988_vm9, 1e+30, %v1596_v44 }
 0x1d9   :  { %502 = vmin.xlane.f32.xlu0 %v487_v62  ;;  %500 = vmin.xlane.f32.xlu1 %v486_v24  ;;  %v1007_v49 = vsel %vm1005_vm8, %v1006_v33, %v1004_v17  ;;  %v1011_v21 = vsel %vm1010_vm6, %v2188_v6, %v1009_v35  ;;  %v1020_v6 = vand.u32 2147483648, %v930_v5  ;;  %v530_v9 = vsel %vm278_vm0, 1, %v2964_v29  ;;  %v2992_v14 = vld [vmem:[#allocation29_spill] sm:$0xff]  ;;  %v3001_v17 = vld [vmem:[#allocation16_spill] sm:$0xff] }
 0x1da   :  { %1032 = vst.msk [vmem:[%s2857_s5 + $0x50] sm:$0xff] %vm27_vm1, %v1007_v49  ;;  %v1014_v46 = vsel %vm1012_vm2, %v1013_v55, %v1011_v21  ;;  %vm2989_vm10 = vcmp.eq.f32.partialorder %v1616_v61, %v1787_v57  ;;  %vm2990_vm5 = vcmp.eq.f32.partialorder %v1611_v58, %v1789_v59  ;;  %v609_v4 = vand.u32 65535, %v530_v9  ;;  %v3000_v24 = vld [vmem:[#allocation13_spill] sm:$0xff] }
 0x1db   :  { %1033 = vst.msk [vmem:[%s2857_s5 + $0x58] sm:$0xff] %vm27_vm1, %v1014_v46  ;;  %v1375_v22 = vpop.eup %1374  ;;  %v495_v60 = vsel %vm2989_vm10, 1e+30, %v1616_v61  ;;  %v494_v52 = vsel %vm2990_vm5, 1e+30, %v1611_v58  ;;  %vm2993_vm12 = vcmp.eq.f32.partialorder %v2991_v54, %v2992_v14  ;;  %vm2994_vm0 = vcmp.eq.f32.partialorder %v1667_v16, %v1921_v7  ;;  %v2995_v58 = vld [vmem:[#allocation10_spill] sm:$0xff] }
 0x1dc   :  { %v1016_v23 = vmul.f32 %v1375_v22, %v930_v5  ;;  %v496_v29 = vsel %vm2993_vm12, 1e+30, %v2991_v54  ;;  %v611_v1 = vcvt.s32.f32 %v609_v4  ;;  %v497_v61 = vsel %vm2994_vm0, 1e+30, %v1667_v16  ;;  %v3004_v22 = vld [vmem:[#allocation20_spill] sm:$0xff] }
 0x1dd   :  { %506 = vmin.xlane.f32.xlu0 %v489_v15  ;;  %504 = vmin.xlane.f32.xlu1 %v488_v43  ;;  %v303_v30 = vand.u32 65535, %v2995_v58  ;;  %v401_v28 = vand.u32 65535, %v2996_v53  ;;  %v317_v35 = vand.u32 65535, %v3001_v17  ;;  %v3003_v43 = vld [vmem:[#allocation19_spill] sm:$0xff] }
 0x1de   :  { %v1018_v39 = vsel %vm1017_vm4, %v930_v5, %v1016_v23  ;;  %v610_v5 = vshrl.u32 %v530_v9, 16  ;;  %v415_v46 = vand.u32 65535, %v3003_v43  ;;  %v3007_v9 = vld [vmem:[#allocation25_spill] sm:$0xff]  ;;  %v3012_v58 = vld [vmem:[#allocation31_spill] sm:$0xff]  ;;  %v3018_v43 = vld [vmem:[#allocation36_spill] sm:$0xff] }
 0x1df   :  { %v1021_v38 = vsel %vm1019_vm3, %v1020_v6, %v1018_v39  ;;  %v305_v62 = vcvt.s32.f32 %v303_v30  ;;  %v403_v50 = vcvt.s32.f32 %v401_v28  ;;  %v319_v15 = vcvt.s32.f32 %v317_v35  ;;  %v3006_v39 = vld [vmem:[#allocation23_spill] sm:$0xff] }
 0x1e0   :  { %1034 = vst.msk [vmem:[%s2857_s5 + $0x60] sm:$0xff] %vm27_vm1, %v1021_v38  ;;  %v612_v44 = vcvt.s32.f32 %v610_v5  ;;  %v331_v5 = vand.u32 65535, %v3007_v9 }
 0x1e1   :  { %510 = vmin.xlane.f32.xlu0 %v491_v3  ;;  %508 = vmin.xlane.f32.xlu1 %v490_v0  ;;  %v417_v0 = vcvt.s32.f32 %v415_v46 }
 0x1e2   :  { %v333_v54 = vcvt.s32.f32 %v331_v5 }
 0x1e5   :  { %514 = vmin.xlane.f32.xlu0 %v493_v37  ;;  %512 = vmin.xlane.f32.xlu1 %v492_v51 }
 0x1e9   :  { %518 = vmin.xlane.f32.xlu0 %v495_v60  ;;  %516 = vmin.xlane.f32.xlu1 %v494_v52  ;;  %v3008_v60 = vld [vmem:[#allocation26_spill] sm:$0xff] }
 0x1ea   :  { %v429_v52 = vand.u32 65535, %v3008_v60 }
 0x1ed   :  { %615 = vadd.xlane.f32.xlu0 %v612_v44  ;;  %520 = vmin.xlane.f32.xlu1 %v496_v29  ;;  %v3011_v29 = vld [vmem:[#allocation30_spill] sm:$0xff] }
 0x1f1   :  { %522 = vmin.xlane.f32.xlu0 %v497_v61  ;;  %613 = vadd.xlane.f32.xlu1 %v611_v1  ;;  %v431_v1 = vcvt.s32.f32 %v429_v52 }
 0x21a   :  { %v2370_v42 = vpop.xlane.xlu1 %307  ;;  %v2372_v33 = vpop.xlane.xlu0 %405 }
 0x21b   :  { %2997 = vst [vmem:[#allocation5_spill] sm:$0xff] %v2370_v42  ;;  %2998 = vst [vmem:[#allocation29_spill] sm:$0xff] %v2372_v33  ;;  %vm309_vm13 = vcmp.eq.f32.partialorder %v2999_v18, %v2370_v42  ;;  %vm407_vm14 = vcmp.eq.f32.partialorder %v3000_v24, %v2372_v33  ;;  %v3014_v18 = vld [vmem:[#allocation34_spill] sm:$0xff] }
 0x21c   :  { %v310_v56 = vsel %vm309_vm13, %v305_v62, inf  ;;  %v408_v16 = vsel %vm407_vm14, %v403_v50, inf  ;;  %v3013_v62 = vld [vmem:[#allocation33_spill] sm:$0xff]  ;;  %v345_v24 = vand.u32 65535, %v3014_v18 }
 0x21d   :  { %311 = vmin.xlane.f32.xlu1 %v310_v56  ;;  %409 = vmin.xlane.f32.xlu0 %v408_v16  ;;  %v443_v50 = vand.u32 65535, %v3013_v62 }
 0x21e   :  { %v2378_v55 = vpop.xlane.xlu1 %627  ;;  %v2380_v45 = vpop.xlane.xlu0 %543  ;;  %v347_v35 = vcvt.s32.f32 %v345_v24  ;;  %v3026_v24 = vld [vmem:[#allocation43_spill] sm:$0xff] }
 0x21f   :  { %v445_v17 = vcvt.s32.f32 %v443_v50  ;;  %v3025_v50 = vld [vmem:[#allocation38_spill] sm:$0xff] }
 0x220   :  { %v457_v18 = vand.u32 65535, %v3025_v50  ;;  %v3031_v50 = vld [vmem:[#allocation44_spill] sm:$0xff] }
 0x222   :  { %v2383_v49 = vpop.xlane.xlu1 %541  ;;  %v2385_v21 = vpop.xlane.xlu0 %321 }
 0x223   :  { %3002 = vst [vmem:[#allocation10_spill] sm:$0xff] %v2385_v21  ;;  %vm323_vm15 = vcmp.eq.f32.partialorder %v3004_v22, %v2385_v21  ;;  %v3038_v21 = vld [vmem:[#allocation24_spill] sm:$0xff] }
 0x224   :  { %v324_v6 = vsel %vm323_vm15, %v319_v15, inf  ;;  %v3017_v15 = vld [vmem:[#allocation35_spill] sm:$0xff] }
 0x225   :  { %325 = vmin.xlane.f32.xlu0 %v324_v6 }
 0x226   :  { %v2390_v23 = vpop.xlane.xlu1 %419  ;;  %v2392_v3 = vpop.xlane.xlu0 %639 }
 0x227   :  { %3005 = vst [vmem:[#allocation11_spill] sm:$0xff] %v2390_v23  ;;  %vm421_vm11 = vcmp.eq.f32.partialorder %v3006_v39, %v2390_v23  ;;  %v3019_v39 = vld [vmem:[#allocation37_spill] sm:$0xff] }
 0x228   :  { %v422_v38 = vsel %vm421_vm11, %v417_v0, inf }
 0x229   :  { %423 = vmin.xlane.f32.xlu1 %v422_v38  ;;  %v359_v38 = vand.u32 65535, %v3019_v39 }
 0x22a   :  { %v2396_v37 = vpop.xlane.xlu1 %555  ;;  %v2398_v51 = vpop.xlane.xlu0 %553 }
 0x22b   :  { %v361_v60 = vcvt.s32.f32 %v359_v38 }
 0x22e   :  { %v2402_v44 = vpop.xlane.xlu1 %335  ;;  %v2404_v4 = vpop.xlane.xlu0 %433 }
 0x22f   :  { %3009 = vst [vmem:[#allocation12_spill] sm:$0xff] %v2402_v44  ;;  %3010 = vst [vmem:[#allocation13_spill] sm:$0xff] %v2404_v4  ;;  %vm337_vm7 = vcmp.eq.f32.partialorder %v3011_v29, %v2402_v44  ;;  %vm435_vm8 = vcmp.eq.f32.partialorder %v3012_v58, %v2404_v4  ;;  %v3037_v4 = vld [vmem:[#allocation22_spill] sm:$0xff] }
 0x230   :  { %v338_v61 = vsel %vm337_vm7, %v333_v54, inf  ;;  %v436_v30 = vsel %vm435_vm8, %v431_v1, inf  ;;  %v3022_v1 = vld [vmem:[#allocation39_spill] sm:$0xff] }
 0x231   :  { %339 = vmin.xlane.f32.xlu1 %v338_v61  ;;  %437 = vmin.xlane.f32.xlu0 %v436_v30  ;;  %v373_v61 = vand.u32 65535, %v3022_v1  ;;  %v3030_v1 = vld [vmem:[#allocation41_spill] sm:$0xff] }
 0x232   :  { %v2410_v53 = vpop.xlane.xlu1 %651  ;;  %v2412_v28 = vpop.xlane.xlu0 %567 }
 0x233   :  { %v375_v62 = vcvt.s32.f32 %v373_v61  ;;  %v471_v61 = vand.u32 65535, %v3030_v1 }
 0x236   :  { %v2416_v56 = vpop.xlane.xlu1 %447  ;;  %v2418_v16 = vpop.xlane.xlu0 %349 }
 0x237   :  { %3015 = vst [vmem:[#allocation16_spill] sm:$0xff] %v2416_v56  ;;  %3016 = vst [vmem:[#allocation19_spill] sm:$0xff] %v2418_v16  ;;  %vm449_vm6 = vcmp.eq.f32.partialorder %v3017_v15, %v2416_v56  ;;  %vm351_vm2 = vcmp.eq.f32.partialorder %v3018_v43, %v2418_v16  ;;  %v459_v43 = vcvt.s32.f32 %v457_v18  ;;  %v3036_v56 = vld [vmem:[#allocation21_spill] sm:$0xff] }
 0x238   :  { %v450_v46 = vsel %vm449_vm6, %v445_v17, inf  ;;  %v352_v22 = vsel %vm351_vm2, %v347_v35, inf }
 0x239   :  { %451 = vmin.xlane.f32.xlu1 %v450_v46  ;;  %353 = vmin.xlane.f32.xlu0 %v352_v22  ;;  %v3028_v46 = vld [vmem:[#allocation47_spill] sm:$0xff] }
 0x23a   :  { %v2424_v6 = vpop.xlane.xlu1 %579  ;;  %v2426_v0 = vpop.xlane.xlu0 %663  ;;  %v387_v22 = vand.u32 65535, %v3028_v46 }
 0x23e   :  { %v2429_v9 = vpop.xlane.xlu1 %363  ;;  %v2431_v5 = vpop.xlane.xlu0 %461 }
 0x23f   :  { %3020 = vst [vmem:[#allocation20_spill] sm:$0xff] %v2429_v9  ;;  %3021 = vst [vmem:[#allocation23_spill] sm:$0xff] %v2431_v5  ;;  %vm365_vm4 = vcmp.eq.f32.partialorder %v1991_v63, %v2429_v9  ;;  %v3027_v63 = vld [vmem:[#allocation40_spill] sm:$0xff]  ;;  %v3034_v9 = vld [vmem:[#allocation9_spill] sm:$0xff] }
 0x240   :  { %v366_v52 = vsel %vm365_vm4, %v361_v60, inf  ;;  %vm463_vm9 = vcmp.eq.f32.partialorder %v3027_v63, %v2431_v5 }
 0x241   :  { %367 = vmin.xlane.f32.xlu1 %v366_v52  ;;  %v464_v39 = vsel %vm463_vm9, %v459_v43, inf  ;;  %v389_v52 = vcvt.s32.f32 %v387_v22  ;;  %v546_v22 = vcvt.f32.s32 %v2380_v45 }
 0x242   :  { %v2435_v54 = vpop.xlane.xlu1 %675  ;;  %v2437_v29 = vpop.xlane.xlu0 %591 }
 0x246   :  { %v2440_v58 = vpop.xlane.xlu1 %475  ;;  %v2442_v30 = vpop.xlane.xlu0 %377 }
 0x247   :  { %3023 = vst [vmem:[#allocation25_spill] sm:$0xff] %v2440_v58  ;;  %3024 = vst [vmem:[#allocation26_spill] sm:$0xff] %v2442_v30  ;;  %vm379_vm3 = vcmp.eq.f32.partialorder %v3026_v24, %v2442_v30  ;;  %vm477_vm5 = vcmp.eq.f32.partialorder %v3031_v50, %v2440_v58  ;;  %v570_v50 = vcvt.f32.s32 %v2412_v28  ;;  %v582_v30 = vcvt.f32.s32 %v2424_v6  ;;  %v3035_v28 = vld [vmem:[#allocation15_spill] sm:$0xff] }
 0x248   :  { %v380_v17 = vsel %vm379_vm3, %v375_v62, inf  ;;  %v773_v16 = vmax.f32 %v3035_v28, %v1754_v41  ;;  %v642_v6 = vcvt.f32.s32 %v2392_v3  ;;  %v733_v28 = vld [vmem:[#allocation3 + $0x8] sm:$0xff] }
 0x249   :  { %381 = vmin.xlane.f32.xlu0 %v380_v17  ;;  %v473_v17 = vcvt.s32.f32 %v471_v61  ;;  %v3032_v61 = vld [vmem:[#allocation7_spill] sm:$0xff]  ;;  %v583_v42 = vshll.u32 %v582_v30, 16 }
 0x24a   :  { %v2449_v35 = vpop.xlane.xlu1 %603  ;;  %v2451_v15 = vpop.xlane.xlu0 %687 }
 0x24b   :  { %v478_v63 = vsel %vm477_vm5, %v473_v17, inf  ;;  %v771_v17 = vmax.f32 %v3032_v61, %v1676_v20  ;;  %v606_v44 = vcvt.f32.s32 %v2449_v35 }
 0x24d   :  { %465 = vmin.xlane.f32.xlu0 %v464_v39  ;;  %v545_v39 = vcvt.f32.s32 %v2383_v49  ;;  %v3033_v49 = vld [vmem:[#allocation6_spill] sm:$0xff] }
 0x24e   :  { %v2454_v38 = vpop.xlane.xlu1 %391  ;;  %v578_v60 = vpop.xlane.xlu0 %577 }
 0x24f   :  { %3029 = vst [vmem:[#allocation30_spill] sm:$0xff] %v2454_v38  ;;  %vm393_vm10 = vcmp.eq.f32.partialorder %v2112_v47, %v2454_v38  ;;  %v558_v47 = vcvt.f32.s32 %v2396_v37  ;;  %v630_v37 = vcvt.f32.s32 %v2378_v55  ;;  %v581_v23 = vcvt.f32.s32 %v578_v60 }
 0x250   :  { %v394_v62 = vsel %vm393_vm10, %v389_v52, inf }
 0x251   :  { %395 = vmin.xlane.f32.xlu1 %v394_v62  ;;  %v547_v62 = vshll.u32 %v546_v22, 16  ;;  %v559_v58 = vshll.u32 %v558_v47, 16  ;;  %v772_v22 = vmax.f32 %v3034_v9, %v1713_v27  ;;  %v571_v47 = vshll.u32 %v570_v50, 16  ;;  %v732_v9 = vld [vmem:[#allocation3] sm:$0xff] }
 0x252   :  { %v566_v24 = vpop.xlane.xlu1 %565  ;;  %v2461_v18 = vpop.xlane.xlu0 %601 }
 0x253   :  { %v569_v38 = vcvt.f32.s32 %v566_v24  ;;  %v557_v24 = vcvt.f32.s32 %v2398_v51 }
 0x255   :  { %479 = vmin.xlane.f32.xlu1 %v478_v63  ;;  %v548_v63 = vadd.s32 %v547_v62, %v545_v39  ;;  %v594_v62 = vcvt.f32.s32 %v2437_v29  ;;  %v560_v61 = vadd.s32 %v559_v58, %v557_v24  ;;  %v572_v39 = vadd.s32 %v571_v47, %v569_v38 }
 0x256   :  { %v590_v43 = vpop.xlane.xlu1 %589  ;;  %v2463_v46 = vpop.xlane.xlu0 %625  ;;  %v654_v29 = vcvt.f32.s32 %v2410_v53  ;;  %v631_v38 = vshll.u32 %v630_v37, 16  ;;  %v584_v24 = vadd.s32 %v583_v42, %v581_v23  ;;  %v605_v47 = vcvt.f32.s32 %v2461_v18  ;;  %v734_v53 = vld [vmem:[#allocation3 + $0x10] sm:$0xff] }
 0x257   :  { %vm693_vm12 = vcmp.gt.s32.totalorder %v548_v63, 1  ;;  %v593_v33 = vcvt.f32.s32 %v590_v43  ;;  %v595_v3 = vshll.u32 %v594_v62, 16  ;;  %v3040_v63 = vld [vmem:[#allocation18_spill] sm:$0xff]  ;;  %v643_v43 = vshll.u32 %v642_v6, 16 }
 0x258   :  { %v780_v58 = vmax.f32 %v3040_v63, %v1789_v59  ;;  %vm694_vm0 = vcmp.gt.s32.totalorder %v560_v61, 1  ;;  %vm695_vm13 = vcmp.gt.s32.totalorder %v572_v39, 1  ;;  %v666_v37 = vcvt.f32.s32 %v2426_v0  ;;  %v735_v39 = vld [vmem:[#allocation3 + $0x18] sm:$0xff] }
 0x259   :  { %v596_v30 = vadd.s32 %v595_v3, %v593_v33  ;;  %v678_v61 = vcvt.f32.s32 %v2435_v54  ;;  %vm696_vm14 = vcmp.gt.s32.totalorder %v584_v24, 1 }
 0x25a   :  { %v2468_v52 = vpop.xlane.xlu1 %637  ;;  %v2470_v1 = vpop.xlane.xlu0 %649  ;;  %v667_v24 = vshll.u32 %v666_v37, 16  ;;  %v3044_v37 = vmax.f32 %v3036_v56, %v1816_v10 }
 0x25b   :  { %vm697_vm15 = vcmp.gt.s32.totalorder %v596_v30, 1 }
 0x25e   :  { %v2475_v5 = vpop.xlane.xlu1 %661  ;;  %v2477_v45 = vpop.xlane.xlu0 %673 }
 0x25f   :  { %v677_v30 = vcvt.f32.s32 %v2477_v45 }
 0x262   :  { %v2496_v51 = vpop.xlane.xlu1 %685  ;;  %v499_v50 = vpop.xlane.xlu0 %498 }
 0x263   :  { %v706_v55 = vsel %vm693_vm12, %v1676_v20, %v499_v50 }
 0x264   :  { %v784_v60 = vmin.f32 %v732_v9, %v706_v55  ;;  %v655_v9 = vshll.u32 %v654_v29, 16  ;;  %v607_v55 = vshll.u32 %v606_v44, 16  ;;  %v3041_v44 = vld [vmem:[#allocation42_spill] sm:$0xff] }
 0x266   :  { %v797_v35 = vmin.f32 %v771_v17, %v784_v60  ;;  %v501_v50 = vpop.xlane.xlu1 %500  ;;  %v503_v62 = vpop.xlane.xlu0 %502  ;;  %v608_v33 = vadd.s32 %v607_v55, %v605_v47  ;;  %v629_v17 = vcvt.f32.s32 %v2463_v46  ;;  %v679_v47 = vshll.u32 %v678_v61, 16 }
 0x267   :  { %v707_v8 = vsel %vm694_vm0, %v1713_v27, %v501_v50  ;;  %v708_v20 = vsel %vm695_vm13, %v1754_v41, %v503_v62  ;;  %v736_v50 = vld [vmem:[#allocation3 + $0x20] sm:$0xff]  ;;  %v641_v62 = vcvt.f32.s32 %v2468_v52 }
 0x268   :  { %850 = vst.msk [vmem:[#allocation3] sm:$0xff] %vm27_vm1, %v797_v35  ;;  %v1035_v42 = vmul.f32 2.0, %v797_v35  ;;  %v785_v23 = vmin.f32 %v733_v28, %v707_v8  ;;  %v786_v18 = vmin.f32 %v734_v53, %v708_v20  ;;  %v653_v8 = vcvt.f32.s32 %v2470_v1 }
 0x269   :  { %v690_v53 = vcvt.f32.s32 %v2451_v15  ;;  %vm698_vm11 = vcmp.gt.s32.totalorder %v608_v33, 1  ;;  %v665_v1 = vcvt.f32.s32 %v2475_v5  ;;  %v3045_v15 = vmax.f32 %v3037_v4, %v1818_v11  ;;  %v737_v5 = vld [vmem:[#allocation3 + $0x28] sm:$0xff] }
 0x26a   :  { %v1048_v6 = vadd.f32 %v1035_v42, %v3041_v44  ;;  %v798_v29 = vmin.f32 %v772_v22, %v785_v23  ;;  %v799_v3 = vmin.f32 %v773_v16, %v786_v18  ;;  %v505_v60 = vpop.xlane.xlu1 %504  ;;  %v507_v0 = vpop.xlane.xlu0 %506  ;;  %v3042_v42 = vld [vmem:[#allocation45_spill] sm:$0xff]  ;;  %v3043_v18 = vld [vmem:[#allocation46_spill] sm:$0xff]  ;;  %v644_v45 = vadd.s32 %v643_v43, %v641_v62 }
 0x26b   :  { %v709_v20 = vsel %vm696_vm14, %v1816_v10, %v505_v60  ;;  %v710_v54 = vsel %vm697_vm15, %v1818_v11, %v507_v0  ;;  %v3046_v43 = vld [vmem:[#allocation17_spill] sm:$0xff]  ;;  %v689_v62 = vcvt.f32.s32 %v2496_v51 }
 0x26c   :  { %v2517_v28 = vmax.f32 %v1048_v6, 0.0  ;;  %851 = vst.msk [vmem:[#allocation3 + $0x8] sm:$0xff] %vm27_vm1, %v798_v29  ;;  %v1036_v46 = vmul.f32 2.0, %v798_v29  ;;  %852 = vst.msk [vmem:[#allocation3 + $0x10] sm:$0xff] %vm27_vm1, %v799_v3  ;;  %v1037_v22 = vmul.f32 2.0, %v799_v3  ;;  %v787_v16 = vmin.f32 %v735_v39, %v709_v20 }
 0x26d   :  { %v788_v52 = vmin.f32 %v736_v50, %v710_v54  ;;  %v632_v39 = vadd.s32 %v631_v38, %v629_v17  ;;  %v656_v6 = vadd.s32 %v655_v9, %v653_v8  ;;  %v668_v20 = vadd.s32 %v667_v24, %v665_v1  ;;  %v739_v8 = vld [vmem:[#allocation3 + $0x38] sm:$0xff] }
 0x26e   :  { %1376 = vrsqrt.f32 %v2517_v28  ;;  %v509_v35 = vpop.xlane.xlu1 %508  ;;  %v2525_v55 = vpop.xlane.xlu0 %510  ;;  %v1049_v23 = vadd.f32 %v1036_v46, %v3042_v42  ;;  %v1050_v44 = vadd.f32 %v1037_v22, %v3043_v18  ;;  %v800_v61 = vmin.f32 %v3044_v37, %v787_v16  ;;  %v3047_v16 = vld [vmem:[#allocation27_spill] sm:$0xff] }
 0x26f   :  { %v801_v33 = vmin.f32 %v3045_v15, %v788_v52  ;;  %v711_v29 = vsel %vm698_vm11, %v1853_v48, %v509_v35  ;;  %v2542_v54 = vadd.s32 %v679_v47, %v677_v30  ;;  %v781_v9 = vmax.f32 %v3046_v43, %v1787_v57  ;;  %v740_v30 = vld [vmem:[#allocation3 + $0x40] sm:$0xff] }
 0x270   :  { %v2536_v3 = vmax.f32 %v1049_v23, 0.0  ;;  %v2538_v60 = vmax.f32 %v1050_v44, 0.0  ;;  %853 = vst.msk [vmem:[#allocation3 + $0x18] sm:$0xff] %vm27_vm1, %v800_v61  ;;  %v1038_v50 = vmul.f32 2.0, %v800_v61  ;;  %v789_v46 = vmin.f32 %v737_v5, %v711_v29 }
 0x271   :  { %854 = vst.msk [vmem:[#allocation3 + $0x20] sm:$0xff] %vm27_vm1, %v801_v33  ;;  %v1039_v0 = vmul.f32 2.0, %v801_v33  ;;  %v691_v17 = vshll.u32 %v690_v53, 16  ;;  %v782_v52 = vmax.f32 %v3047_v16, %v2992_v14  ;;  %vm700_vm7 = vcmp.gt.s32.totalorder %v632_v39, 1 }
 0x272   :  { %v513_v22 = vpop.xlane.xlu1 %512  ;;  %v515_v38 = vpop.xlane.xlu0 %514  ;;  %1378 = vrsqrt.f32 %v2536_v3  ;;  %vm701_vm8 = vcmp.gt.s32.totalorder %v644_v45, 1  ;;  %vm702_vm6 = vcmp.gt.s32.totalorder %v656_v6, 1  ;;  %v1051_v24 = vadd.f32 %v1038_v50, %v2069_v13  ;;  %v741_v45 = vld [vmem:[#allocation3 + $0x48] sm:$0xff]  ;;  %v742_v50 = vld [vmem:[#allocation3 + $0x50] sm:$0xff] }
 0x273   :  { %1380 = vrsqrt.f32 %v2538_v60  ;;  %v1052_v47 = vadd.f32 %v1039_v0, %v2080_v2  ;;  %v3048_v53 = vmax.f32 %v3038_v21, %v1853_v48  ;;  %v713_v51 = vsel %vm700_vm7, %v1674_v19, %v513_v22 }
 0x274   :  { %vm703_vm2 = vcmp.gt.s32.totalorder %v668_v20, 1  ;;  %vm704_vm4 = vcmp.gt.s32.totalorder %v2542_v54, 1  ;;  %v791_v35 = vmin.f32 %v739_v8, %v713_v51  ;;  %v714_v42 = vsel %vm701_vm8, %v1752_v40, %v515_v38 }
 0x275   :  { %v802_v1 = vmin.f32 %v3048_v53, %v789_v46  ;;  %v2559_v44 = vadd.s32 %v691_v17, %v689_v62  ;;  %v2561_v13 = vmax.f32 %v1051_v24, 0.0  ;;  %v2563_v2 = vmax.f32 %v1052_v47, 0.0 }
 0x276   :  { %v517_v23 = vpop.xlane.xlu1 %516  ;;  %v519_v18 = vpop.xlane.xlu0 %518  ;;  %vm1076_vm3 = vcmp.eq.f32.partialorder %v2517_v28, inf  ;;  %vm1078_vm9 = vcmp.eq.f32.partialorder %v2517_v28, 0.0  ;;  %v3049_v15 = vmax.f32 %v3033_v49, %v1674_v19  ;;  %v792_v5 = vmin.f32 %v740_v30, %v714_v42 }
 0x277   :  { %855 = vst.msk [vmem:[#allocation3 + $0x28] sm:$0xff] %vm27_vm1, %v802_v1  ;;  %v1040_v37 = vmul.f32 2.0, %v802_v1  ;;  %1382 = vrsqrt.f32 %v2561_v13  ;;  %v715_v29 = vsel %vm702_vm6, %v1789_v59, %v517_v23  ;;  %v716_v0 = vsel %vm703_vm2, %v1787_v57, %v519_v18 }
 0x278   :  { %v1377_v61 = vpop.eup %1376  ;;  %v804_v33 = vmin.f32 %v3049_v15, %v791_v35  ;;  %v1079_v46 = vand.u32 2147483648, %v2517_v28  ;;  %vm1083_vm10 = vcmp.eq.f32.partialorder %v2536_v3, inf  ;;  %vm1085_vm5 = vcmp.eq.f32.partialorder %v2536_v3, 0.0 }
 0x279   :  { %v1075_v39 = vmul.f32 %v1377_v61, %v2517_v28  ;;  %1384 = vrsqrt.f32 %v2563_v2  ;;  %v1086_v6 = vand.u32 2147483648, %v2536_v3  ;;  %v1053_v38 = vadd.f32 %v1040_v37, %v2085_v34 }
 0x27a   :  { %857 = vst.msk [vmem:[#allocation3 + $0x38] sm:$0xff] %vm27_vm1, %v804_v33  ;;  %v1042_v20 = vmul.f32 2.0, %v804_v33  ;;  %v521_v17 = vpop.xlane.xlu1 %520  ;;  %v3050_v8 = vmax.f32 %v3039_v12, %v1752_v40  ;;  %v793_v47 = vmin.f32 %v741_v45, %v715_v29  ;;  %v794_v53 = vmin.f32 %v742_v50, %v716_v0  ;;  %v616_v51 = vpop.xlane.xlu0 %615  ;;  %v743_v29 = vld [vmem:[#allocation3 + $0x58] sm:$0xff] }
 0x27b   :  { %v1077_v22 = vsel %vm1076_vm3, %v2517_v28, %v1075_v39  ;;  %vm1090_vm12 = vcmp.eq.f32.partialorder %v2538_v60, inf  ;;  %vm1092_vm0 = vcmp.eq.f32.partialorder %v2538_v60, 0.0  ;;  %v2598_v34 = vmax.f32 %v1053_v38, 0.0 }
 0x27c   :  { %v1080_v62 = vsel %vm1078_vm9, %v1079_v46, %v1077_v22  ;;  %v805_v24 = vmin.f32 %v3050_v8, %v792_v5  ;;  %v1379_v1 = vpop.eup %1378  ;;  %v1055_v28 = vadd.f32 %v1042_v20, %v2105_v32  ;;  %v806_v23 = vmin.f32 %v780_v58, %v793_v47 }
 0x27d   :  { %1165 = vst.msk [vmem:[%s2858_s6] sm:$0xff] %vm27_vm1, %v1080_v62  ;;  %v1381_v30 = vpop.eup %1380  ;;  %v1082_v35 = vmul.f32 %v1379_v1, %v2536_v3  ;;  %v807_v18 = vmin.f32 %v781_v9, %v794_v53  ;;  %v1093_v61 = vand.u32 2147483648, %v2538_v60  ;;  %1386 = vrsqrt.f32 %v2598_v34 }
 0x27e   :  { %858 = vst.msk [vmem:[#allocation3 + $0x40] sm:$0xff] %vm27_vm1, %v805_v24  ;;  %v1043_v42 = vmul.f32 2.0, %v805_v24  ;;  %v1089_v37 = vmul.f32 %v1381_v30, %v2538_v60  ;;  %v717_v32 = vsel %vm704_vm4, %v2992_v14, %v521_v17  ;;  %v2618_v33 = vmax.f32 %v1055_v28, 0.0  ;;  %859 = vst.msk [vmem:[#allocation3 + $0x48] sm:$0xff] %vm27_vm1, %v806_v23  ;;  %v614_v50 = vpop.xlane.xlu1 %613 }
 0x27f   :  { %v1084_v15 = vsel %vm1083_vm10, %v2536_v3, %v1082_v35  ;;  %860 = vst.msk [vmem:[#allocation3 + $0x50] sm:$0xff] %vm27_vm1, %v807_v18  ;;  %v618_v9 = vcvt.f32.s32 %v616_v51  ;;  %v1044_v39 = vmul.f32 2.0, %v806_v23  ;;  %v1045_v45 = vmul.f32 2.0, %v807_v18  ;;  %v523_v35 = vpop.xlane.xlu0 %522  ;;  %v3052_v18 = vld [vmem:[#allocation32_spill] sm:$0xff] }
 0x280   :  { %v1056_v58 = vadd.f32 %v1043_v42, %v2110_v31  ;;  %v1087_v5 = vsel %vm1085_vm5, %v1086_v6, %v1084_v15  ;;  %v1091_v54 = vsel %vm1090_vm12, %v2538_v60, %v1089_v37  ;;  %vm1097_vm13 = vcmp.eq.f32.partialorder %v2561_v13, inf }
 0x281   :  { %1166 = vst.msk [vmem:[%s2858_s6 + $0x8] sm:$0xff] %vm27_vm1, %v1087_v5  ;;  %v1094_v31 = vsel %vm1092_vm0, %v1093_v61, %v1091_v54  ;;  %vm1099_vm14 = vcmp.eq.f32.partialorder %v2561_v13, 0.0  ;;  %1388 = vrsqrt.f32 %v2618_v33  ;;  %v1383_v3 = vpop.eup %1382  ;;  %v1100_v0 = vand.u32 2147483648, %v2561_v13  ;;  %v3053_v54 = vld [vmem:[#allocation48_spill] sm:$0xff] }
 0x282   :  { %1167 = vst.msk [vmem:[%s2858_s6 + $0x10] sm:$0xff] %vm27_vm1, %v1094_v31  ;;  %v2642_v46 = vmax.f32 %v1056_v58, 0.0  ;;  %v1057_v22 = vadd.f32 %v1044_v39, %v2134_v25  ;;  %v1058_v60 = vadd.f32 %v1045_v45, %v2141_v26  ;;  %v1096_v38 = vmul.f32 %v1383_v3, %v2561_v13 }
 0x283   :  { %v1385_v6 = vpop.eup %1384  ;;  %vm1104_vm15 = vcmp.eq.f32.partialorder %v2563_v2, inf  ;;  %v795_v20 = vmin.f32 %v743_v29, %v717_v32  ;;  %v617_v17 = vcvt.f32.s32 %v614_v50  ;;  %vm1106_vm11 = vcmp.eq.f32.partialorder %v2563_v2, 0.0 }
 0x284   :  { %v1103_v62 = vmul.f32 %v1385_v6, %v2563_v2  ;;  %1390 = vrsqrt.f32 %v2642_v46  ;;  %v619_v8 = vshll.u32 %v618_v9, 16  ;;  %v1098_v25 = vsel %vm1097_vm13, %v2561_v13, %v1096_v38  ;;  %v3051_v13 = vld [vmem:[#allocation28_spill] sm:$0xff] }
 0x285   :  { %v1107_v26 = vand.u32 2147483648, %v2563_v2  ;;  %v2655_v24 = vmax.f32 %v1057_v22, 0.0  ;;  %v2657_v47 = vmax.f32 %v1058_v60, 0.0  ;;  %v1101_v53 = vsel %vm1099_vm14, %v1100_v0, %v1098_v25 }
 0x286   :  { %v1105_v1 = vsel %vm1104_vm15, %v2563_v2, %v1103_v62  ;;  %v808_v28 = vmin.f32 %v782_v52, %v795_v20  ;;  %v620_v51 = vadd.s32 %v619_v8, %v617_v17  ;;  %1168 = vst.msk [vmem:[%s2858_s6 + $0x18] sm:$0xff] %vm27_vm1, %v1101_v53  ;;  %v777_v23 = vmax.f32 %v3051_v13, %v1881_v36  ;;  %v738_v52 = vld [vmem:[#allocation3 + $0x30] sm:$0xff]  ;;  %v744_v2 = vld [vmem:[#allocation3 + $0x60] sm:$0xff] }
 0x287   :  { %v1108_v30 = vsel %vm1106_vm11, %v1107_v26, %v1105_v1  ;;  %1392 = vrsqrt.f32 %v2655_v24  ;;  %v1387_v42 = vpop.eup %1386  ;;  %vm705_vm7 = vcmp.gt.s32.totalorder %v2559_v44, 1  ;;  %v783_v37 = vmax.f32 %v3052_v18, %v1921_v7  ;;  %v1402_v1 = vld [vmem:[%s2856_s4 + $0x30] sm:$0xff] }
 0x288   :  { %1169 = vst.msk [vmem:[%s2858_s6 + $0x20] sm:$0xff] %vm27_vm1, %v1108_v30  ;;  %1394 = vrsqrt.f32 %v2657_v47  ;;  %861 = vst.msk [vmem:[#allocation3 + $0x58] sm:$0xff] %vm27_vm1, %v808_v28  ;;  %v1110_v61 = vmul.f32 %v1387_v42, %v2598_v34  ;;  %vm1111_vm8 = vcmp.eq.f32.partialorder %v2598_v34, inf  ;;  %v1046_v32 = vmul.f32 2.0, %v808_v28 }
 0x289   :  { %vm699_vm6 = vcmp.gt.s32.totalorder %v620_v51, 1  ;;  %vm1113_vm2 = vcmp.eq.f32.partialorder %v2598_v34, 0.0  ;;  %v1114_v44 = vand.u32 2147483648, %v2598_v34  ;;  %v718_v58 = vsel %vm705_vm7, %v1921_v7, %v523_v35  ;;  %v3054_v51 = vld [vmem:[#allocation49_spill] sm:$0xff] }
 0x28a   :  { %v712_v15 = vsel %vm699_vm6, %v1881_v36, %v2525_v55  ;;  %v1112_v5 = vsel %vm1111_vm8, %v2598_v34, %v1110_v61  ;;  %v1059_v39 = vadd.f32 %v1046_v32, %v3053_v54  ;;  %v796_v29 = vmin.f32 %v744_v2, %v718_v58 }
 0x28b   :  { %v1389_v9 = vpop.eup %1388  ;;  %v790_v45 = vmin.f32 %v738_v52, %v712_v15  ;;  %v1115_v50 = vsel %vm1113_vm2, %v1114_v44, %v1112_v5  ;;  %vm1125_vm4 = vcmp.eq.f32.partialorder %v2618_v33, inf  ;;  %v1128_v55 = vand.u32 2147483648, %v2618_v33 }
 0x28c   :  { %v1124_v31 = vmul.f32 %v1389_v9, %v2618_v33  ;;  %1170 = vst.msk [vmem:[%s2858_s6 + $0x28] sm:$0xff] %vm27_vm1, %v1115_v50  ;;  %v1072_v3 = vmax.f32 %v1059_v39, 0.0  ;;  %v809_v22 = vmin.f32 %v783_v37, %v796_v29  ;;  %vm1127_vm3 = vcmp.eq.f32.partialorder %v2618_v33, 0.0 }
 0x28d   :  { %v803_v0 = vmin.f32 %v777_v23, %v790_v45  ;;  %vm1132_vm9 = vcmp.eq.f32.partialorder %v2642_v46, inf  ;;  %v1135_v20 = vand.u32 2147483648, %v2642_v46  ;;  %vm1134_vm10 = vcmp.eq.f32.partialorder %v2642_v46, 0.0 }
 0x28e   :  { %v1391_v34 = vpop.eup %1390  ;;  %v1126_v60 = vsel %vm1125_vm4, %v2618_v33, %v1124_v31  ;;  %1396 = vrsqrt.f32 %v1072_v3  ;;  %862 = vst.msk [vmem:[#allocation3 + $0x60] sm:$0xff] %vm27_vm1, %v809_v22  ;;  %v1047_v62 = vmul.f32 2.0, %v809_v22  ;;  %vm1139_vm5 = vcmp.eq.f32.partialorder %v2655_v24, inf }
 0x28f   :  { %v1129_v6 = vsel %vm1127_vm3, %v1128_v55, %v1126_v60  ;;  %v1131_v38 = vmul.f32 %v1391_v34, %v2642_v46  ;;  %856 = vst.msk [vmem:[#allocation3 + $0x30] sm:$0xff] %vm27_vm1, %v803_v0  ;;  %v1041_v17 = vmul.f32 2.0, %v803_v0  ;;  %vm1141_vm12 = vcmp.eq.f32.partialorder %v2655_v24, 0.0  ;;  %v3055_v0 = vld [vmem:[#allocation5_spill] sm:$0xff] }
 0x290   :  { %1172 = vst.msk [vmem:[%s2858_s6 + $0x38] sm:$0xff] %vm27_vm1, %v1129_v6  ;;  %v1060_v30 = vadd.f32 %v1047_v62, %v3054_v51  ;;  %vm1146_vm0 = vcmp.eq.f32.partialorder %v2657_v47, inf  ;;  %v1149_v23 = vand.u32 2147483648, %v2657_v47  ;;  %vm1148_vm13 = vcmp.eq.f32.partialorder %v2657_v47, 0.0  ;;  %v3056_v34 = vld [vmem:[#allocation29_spill] sm:$0xff]  ;;  %v3059_v51 = vld [vmem:[#allocation10_spill] sm:$0xff] }
 0x291   :  { %v1393_v33 = vpop.eup %1392  ;;  %v1133_v8 = vsel %vm1132_vm9, %v2642_v46, %v1131_v38  ;;  %v1054_v28 = vadd.f32 %v1402_v1, %v1041_v17  ;;  %v1142_v46 = vand.u32 2147483648, %v2655_v24  ;;  %vm1153_vm14 = vcmp.eq.f32.partialorder %v1072_v3, inf  ;;  %v3057_v1 = vld [vmem:[#allocation7_spill] sm:$0xff] }
 0x292   :  { %v1395_v25 = vpop.eup %1394  ;;  %v1136_v26 = vsel %vm1134_vm10, %v1135_v20, %v1133_v8  ;;  %v1138_v53 = vmul.f32 %v1393_v33, %v2655_v24  ;;  %v1073_v2 = vmax.f32 %v1060_v30, 0.0  ;;  %v1156_v15 = vand.u32 2147483648, %v1072_v3  ;;  %v745_v8 = vld [vmem:[#allocation4] sm:$0xff] }
 0x293   :  { %1173 = vst.msk [vmem:[%s2858_s6 + $0x40] sm:$0xff] %vm27_vm1, %v1136_v26  ;;  %v1145_v35 = vmul.f32 %v1395_v25, %v2657_v47  ;;  %v1067_v52 = vmax.f32 %v1054_v28, 0.0  ;;  %vm1155_vm15 = vcmp.eq.f32.partialorder %v1072_v3, 0.0  ;;  %v314_v22 = vcvt.f32.s32 %v3055_v0  ;;  %v752_v25 = vld [vmem:[#allocation4 + $0x38] sm:$0xff]  ;;  %v3058_v28 = vld [vmem:[#allocation8_spill] sm:$0xff] }
 0x294   :  { %v1140_v42 = vsel %vm1139_vm5, %v2655_v24, %v1138_v53  ;;  %vm1160_vm8 = vcmp.eq.f32.partialorder %v1073_v2, inf  ;;  %v1163_v50 = vand.u32 2147483648, %v1073_v2  ;;  %vm1162_vm6 = vcmp.eq.f32.partialorder %v1073_v2, 0.0 }
 0x295   :  { %v1143_v37 = vsel %vm1141_vm12, %v1142_v46, %v1140_v42  ;;  %v1147_v61 = vsel %vm1146_vm0, %v2657_v47, %v1145_v35  ;;  %1398 = vrsqrt.f32 %v1067_v52  ;;  %vm1118_vm11 = vcmp.eq.f32.partialorder %v1067_v52, inf  ;;  %v3060_v42 = vld [vmem:[#allocation11_spill] sm:$0xff] }
 0x296   :  { %1174 = vst.msk [vmem:[%s2858_s6 + $0x48] sm:$0xff] %vm27_vm1, %v1143_v37  ;;  %v1150_v32 = vsel %vm1148_vm13, %v1149_v23, %v1147_v61  ;;  %1400 = vrsqrt.f32 %v1073_v2  ;;  %v1121_v39 = vand.u32 2147483648, %v1067_v52  ;;  %vm1120_vm7 = vcmp.eq.f32.partialorder %v1067_v52, 0.0  ;;  %v3061_v61 = vld [vmem:[#allocation9_spill] sm:$0xff] }
 0x297   :  { %1175 = vst.msk [vmem:[%s2858_s6 + $0x50] sm:$0xff] %vm27_vm1, %v1150_v32  ;;  %v412_v60 = vcvt.f32.s32 %v3056_v34  ;;  %v315_v20 = vshll.u32 %v314_v22, 16  ;;  %vm817_vm2 = vcmp.lt.f32.partialorder %v1674_v19, %v3033_v49  ;;  %vm810_vm4 = vcmp.lt.f32.partialorder %v3058_v28, %v3057_v1  ;;  %v3064_v22 = vld [vmem:[#allocation15_spill] sm:$0xff] }
 0x298   :  { %v1397_v24 = vpop.eup %1396  ;;  %v328_v30 = vcvt.f32.s32 %v3059_v51  ;;  %v426_v23 = vcvt.f32.s32 %v3060_v42  ;;  %vm811_vm3 = vcmp.lt.f32.partialorder %v1713_v27, %v3061_v61  ;;  %vm818_vm9 = vcmp.lt.f32.partialorder %v1752_v40, %v3039_v12  ;;  %v3063_v27 = vld [vmem:[#allocation13_spill] sm:$0xff]  ;;  %v3067_v51 = vld [vmem:[#allocation20_spill] sm:$0xff] }
 0x299   :  { %v1152_v44 = vmul.f32 %v1397_v24, %v1072_v3  ;;  %v413_v17 = vshll.u32 %v412_v60, 16  ;;  %v754_v12 = vld [vmem:[#allocation4 + $0x48] sm:$0xff]  ;;  %vm812_vm10 = vcmp.lt.f32.partialorder %v1754_v41, %v3064_v22  ;;  %vm819_vm5 = vcmp.lt.f32.partialorder %v1789_v59, %v3040_v63  ;;  %v3065_v60 = vld [vmem:[#allocation16_spill] sm:$0xff] }
 0x29a   :  { %v329_v49 = vshll.u32 %v328_v30, 16  ;;  %v427_v24 = vshll.u32 %v426_v23, 16  ;;  %vm820_vm12 = vcmp.lt.f32.partialorder %v1787_v57, %v3046_v43  ;;  %vm813_vm0 = vcmp.lt.f32.partialorder %v1816_v10, %v3036_v56  ;;  %v749_v43 = vld [vmem:[#allocation4 + $0x20] sm:$0xff] }
 0x29b   :  { %v1154_v58 = vsel %vm1153_vm14, %v1072_v3, %v1152_v44  ;;  %v370_v30 = vcvt.f32.s32 %v3067_v51  ;;  %vm814_vm13 = vcmp.lt.f32.partialorder %v1818_v11, %v3037_v4  ;;  %vm815_vm14 = vcmp.lt.f32.partialorder %v1853_v48, %v3038_v21  ;;  %v3071_v48 = vld [vmem:[#allocation25_spill] sm:$0xff] }
 0x29c   :  { %v1157_v47 = vsel %vm1155_vm15, %v1156_v15, %v1154_v58  ;;  %v753_v58 = vld [vmem:[#allocation4 + $0x40] sm:$0xff]  ;;  %vm821_vm15 = vcmp.lt.f32.partialorder %v2992_v14, %v3047_v16  ;;  %v482_v21 = vcvt.f32.s32 %v3071_v48 }
 0x29d   :  { %1176 = vst.msk [vmem:[%s2858_s6 + $0x58] sm:$0xff] %vm27_vm1, %v1157_v47  ;;  %v371_v10 = vshll.u32 %v370_v30, 16 }
 0x29e   :  { %v483_v14 = vshll.u32 %v482_v21, 16 }
 0x29f   :  { %v1399_v9 = vpop.eup %1398 }
 0x2a0   :  { %v1401_v5 = vpop.eup %1400  ;;  %v1117_v54 = vmul.f32 %v1399_v9, %v1067_v52  ;;  %v3062_v9 = vld [vmem:[#allocation12_spill] sm:$0xff] }
 0x2a1   :  { %v1159_v45 = vmul.f32 %v1401_v5, %v1073_v2  ;;  %v342_v5 = vcvt.f32.s32 %v3062_v9 }
 0x2a2   :  { %v1119_v29 = vsel %vm1118_vm11, %v1067_v52, %v1117_v54  ;;  %vm816_vm11 = vcmp.lt.f32.partialorder %v1881_v36, %v3051_v13 }
 0x2a3   :  { %v1122_v31 = vsel %vm1120_vm7, %v1121_v39, %v1119_v29  ;;  %v1161_v55 = vsel %vm1160_vm8, %v1073_v2, %v1159_v45  ;;  %v746_v2 = vld [vmem:[#allocation4 + $0x8] sm:$0xff]  ;;  %v440_v39 = vcvt.f32.s32 %v3063_v27  ;;  %v343_v29 = vshll.u32 %v342_v5, 16  ;;  %v756_v5 = vld [vmem:[#allocation4 + $0x58] sm:$0xff] }
 0x2a4   :  { %1171 = vst.msk [vmem:[%s2858_s6 + $0x30] sm:$0xff] %vm27_vm1, %v1122_v31  ;;  %v1164_v3 = vsel %vm1162_vm6, %v1163_v50, %v1161_v55  ;;  %vm822_vm7 = vcmp.lt.f32.partialorder %v1921_v7, %v3052_v18 }
 0x2a5   :  { %1177 = vst.msk [vmem:[%s2858_s6 + $0x60] sm:$0xff] %vm27_vm1, %v1164_v3  ;;  %v441_v55 = vshll.u32 %v440_v39, 16  ;;  %v747_v3 = vld [vmem:[#allocation4 + $0x10] sm:$0xff] }
 0x2aa   :  { %v312_v6 = vpop.xlane.xlu1 %311  ;;  %v410_v38 = vpop.xlane.xlu0 %409 }
 0x2ab   :  { %v313_v62 = vcvt.f32.s32 %v312_v6  ;;  %v411_v33 = vcvt.f32.s32 %v410_v38  ;;  %v454_v6 = vcvt.f32.s32 %v3065_v60  ;;  %v3066_v38 = vld [vmem:[#allocation19_spill] sm:$0xff] }
 0x2ad   :  { %v316_v26 = vadd.s32 %v315_v20, %v313_v62  ;;  %v414_v53 = vadd.s32 %v413_v17, %v411_v33  ;;  %v356_v20 = vcvt.f32.s32 %v3066_v38  ;;  %v455_v63 = vshll.u32 %v454_v6, 16 }
 0x2af   :  { %v823_v46 = vsel %vm810_vm4, %v316_v26, %v745_v8  ;;  %v830_v35 = vsel %vm817_vm2, %v414_v53, %v752_v25  ;;  %v357_v33 = vshll.u32 %v356_v20, 16  ;;  %v755_v26 = vld [vmem:[#allocation4 + $0x50] sm:$0xff]  ;;  %v748_v53 = vld [vmem:[#allocation4 + $0x18] sm:$0xff] }
 0x2b0   :  { %863 = vst.msk [vmem:[#allocation4] sm:$0xff] %vm27_vm1, %v823_v46  ;;  %1178 = vst.msk [vmem:[%s2859_s7] sm:$0xff] %vm27_vm1, %v823_v46 }
 0x2b1   :  { %870 = vst.msk [vmem:[#allocation4 + $0x38] sm:$0xff] %vm27_vm1, %v830_v35  ;;  %1185 = vst.msk [vmem:[%s2859_s7 + $0x38] sm:$0xff] %vm27_vm1, %v830_v35 }
 0x2b2   :  { %v326_v19 = vpop.xlane.xlu0 %325 }
 0x2b3   :  { %v327_v52 = vcvt.f32.s32 %v326_v19 }
 0x2b5   :  { %v330_v37 = vadd.s32 %v329_v49, %v327_v52  ;;  %v3068_v49 = vld [vmem:[#allocation26_spill] sm:$0xff] }
 0x2b6   :  { %v424_v32 = vpop.xlane.xlu1 %423  ;;  %v384_v42 = vcvt.f32.s32 %v3068_v49 }
 0x2b7   :  { %v824_v44 = vsel %vm811_vm3, %v330_v37, %v746_v2  ;;  %v425_v15 = vcvt.f32.s32 %v424_v32  ;;  %v3069_v2 = vld [vmem:[#allocation23_spill] sm:$0xff] }
 0x2b8   :  { %864 = vst.msk [vmem:[#allocation4 + $0x8] sm:$0xff] %vm27_vm1, %v824_v44  ;;  %1179 = vst.msk [vmem:[%s2859_s7 + $0x8] sm:$0xff] %vm27_vm1, %v824_v44  ;;  %v468_v37 = vcvt.f32.s32 %v3069_v2  ;;  %v385_v61 = vshll.u32 %v384_v42, 16 }
 0x2b9   :  { %v428_v47 = vadd.s32 %v427_v24, %v425_v15  ;;  %v750_v24 = vld [vmem:[#allocation4 + $0x28] sm:$0xff]  ;;  %v3070_v15 = vld [vmem:[#allocation30_spill] sm:$0xff] }
 0x2ba   :  { %v469_v4 = vshll.u32 %v468_v37, 16 }
 0x2bb   :  { %v831_v54 = vsel %vm818_vm9, %v428_v47, %v753_v58  ;;  %v398_v58 = vcvt.f32.s32 %v3070_v15 }
 0x2bc   :  { %871 = vst.msk [vmem:[#allocation4 + $0x40] sm:$0xff] %vm27_vm1, %v831_v54  ;;  %1186 = vst.msk [vmem:[%s2859_s7 + $0x40] sm:$0xff] %vm27_vm1, %v831_v54 }
 0x2bd   :  { %v399_v39 = vshll.u32 %v398_v58, 16 }
 0x2be   :  { %v340_v45 = vpop.xlane.xlu1 %339  ;;  %v438_v31 = vpop.xlane.xlu0 %437 }
 0x2bf   :  { %v341_v50 = vcvt.f32.s32 %v340_v45  ;;  %v439_v0 = vcvt.f32.s32 %v438_v31 }
 0x2c1   :  { %v344_v40 = vadd.s32 %v343_v29, %v341_v50  ;;  %v442_v34 = vadd.s32 %v441_v55, %v439_v0  ;;  %v751_v50 = vld [vmem:[#allocation4 + $0x30] sm:$0xff]  ;;  %v757_v0 = vld [vmem:[#allocation4 + $0x60] sm:$0xff] }
 0x2c3   :  { %v825_v17 = vsel %vm812_vm10, %v344_v40, %v747_v3  ;;  %v832_v62 = vsel %vm819_vm5, %v442_v34, %v754_v12 }
 0x2c4   :  { %865 = vst.msk [vmem:[#allocation4 + $0x10] sm:$0xff] %vm27_vm1, %v825_v17  ;;  %1180 = vst.msk [vmem:[%s2859_s7 + $0x10] sm:$0xff] %vm27_vm1, %v825_v17 }
 0x2c5   :  { %872 = vst.msk [vmem:[#allocation4 + $0x48] sm:$0xff] %vm27_vm1, %v832_v62  ;;  %1187 = vst.msk [vmem:[%s2859_s7 + $0x48] sm:$0xff] %vm27_vm1, %v832_v62 }
 0x2c6   :  { %v452_v41 = vpop.xlane.xlu1 %451  ;;  %v354_v59 = vpop.xlane.xlu0 %353 }
 0x2c7   :  { %v453_v8 = vcvt.f32.s32 %v452_v41  ;;  %v355_v25 = vcvt.f32.s32 %v354_v59 }
 0x2c9   :  { %v456_v1 = vadd.s32 %v455_v63, %v453_v8  ;;  %v358_v28 = vadd.s32 %v357_v33, %v355_v25 }
 0x2cb   :  { %v833_v46 = vsel %vm820_vm12, %v456_v1, %v755_v26  ;;  %v826_v35 = vsel %vm813_vm0, %v358_v28, %v748_v53 }
 0x2cc   :  { %873 = vst.msk [vmem:[#allocation4 + $0x50] sm:$0xff] %vm27_vm1, %v833_v46  ;;  %1188 = vst.msk [vmem:[%s2859_s7 + $0x50] sm:$0xff] %vm27_vm1, %v833_v46 }
 0x2cd   :  { %866 = vst.msk [vmem:[#allocation4 + $0x18] sm:$0xff] %vm27_vm1, %v826_v35  ;;  %1181 = vst.msk [vmem:[%s2859_s7 + $0x18] sm:$0xff] %vm27_vm1, %v826_v35 }
 0x2ce   :  { %v368_v57 = vpop.xlane.xlu1 %367 }
 0x2cf   :  { %v369_v56 = vcvt.f32.s32 %v368_v57 }
 0x2d1   :  { %v372_v19 = vadd.s32 %v371_v10, %v369_v56 }
 0x2d3   :  { %v827_v23 = vsel %vm814_vm13, %v372_v19, %v749_v43 }
 0x2d4   :  { %867 = vst.msk [vmem:[#allocation4 + $0x20] sm:$0xff] %vm27_vm1, %v827_v23  ;;  %1182 = vst.msk [vmem:[%s2859_s7 + $0x20] sm:$0xff] %vm27_vm1, %v827_v23 }
 0x2d6   :  { %v382_v52 = vpop.xlane.xlu0 %381 }
 0x2d7   :  { %v383_v32 = vcvt.f32.s32 %v382_v52 }
 0x2d9   :  { %v386_v44 = vadd.s32 %v385_v61, %v383_v32 }
 0x2da   :  { %v466_v11 = vpop.xlane.xlu0 %465 }
 0x2db   :  { %v828_v47 = vsel %vm815_vm14, %v386_v44, %v750_v24  ;;  %v467_v9 = vcvt.f32.s32 %v466_v11 }
 0x2dc   :  { %868 = vst.msk [vmem:[#allocation4 + $0x28] sm:$0xff] %vm27_vm1, %v828_v47  ;;  %1183 = vst.msk [vmem:[%s2859_s7 + $0x28] sm:$0xff] %vm27_vm1, %v828_v47 }
 0x2dd   :  { %v470_v54 = vadd.s32 %v469_v4, %v467_v9 }
 0x2de   :  { %v396_v27 = vpop.xlane.xlu1 %395 }
 0x2df   :  { %v834_v45 = vsel %vm821_vm15, %v470_v54, %v756_v5  ;;  %v397_v29 = vcvt.f32.s32 %v396_v27 }
 0x2e0   :  { %874 = vst.msk [vmem:[#allocation4 + $0x58] sm:$0xff] %vm27_vm1, %v834_v45  ;;  %1189 = vst.msk [vmem:[%s2859_s7 + $0x58] sm:$0xff] %vm27_vm1, %v834_v45 }
 0x2e1   :  { %v400_v31 = vadd.s32 %v399_v39, %v397_v29 }
 0x2e2   :  { %v480_v55 = vpop.xlane.xlu1 %479 }
 0x2e3   :  { %v829_v16 = vsel %vm816_vm11, %v400_v31, %v751_v50  ;;  %v481_v3 = vcvt.f32.s32 %v480_v55 }
 0x2e4   :  { %869 = vst.msk [vmem:[#allocation4 + $0x30] sm:$0xff] %vm27_vm1, %v829_v16  ;;  %1184 = vst.msk [vmem:[%s2859_s7 + $0x30] sm:$0xff] %vm27_vm1, %v829_v16 }
 0x2e5   :  { %v484_v40 = vadd.s32 %v483_v14, %v481_v3 }
 0x2e7   :  { %v835_v12 = vsel %vm822_vm7, %v484_v40, %v757_v0 }
 0x2e8   :  { %875 = vst.msk [vmem:[#allocation4 + $0x60] sm:$0xff] %vm27_vm1, %v835_v12  ;;  %1190 = vst.msk [vmem:[%s2859_s7 + $0x60] sm:$0xff] %vm27_vm1, %v835_v12 }

</bundles_post_ra>
